<compile_context>
chip_gen: v6e
topology: v6e:2x2x1
jax: 0.10.0
libtpu: 0.0.40
codegen_flags: <defaults>
</compile_context>

<pallas_src>
import functools

import jax
import jax.numpy as jnp
import numpy as np
from jax.experimental import pallas as pl
from jax.experimental.pallas import tpu as pltpu

# ----------------------------- configuration (small, synthetic) ----------------------
B = 2                       # batch
C = 4                       # image channels
H = W = 16                  # image spatial
F = 128                     # img_feature_size (stand-in for 512 of resnet18)
MANO_NEURONS = (64, 64)     # cfg.MANO.NEURONS
NCOMPS = 15                 # cfg.MANO.COMPS
POSE_DIM = NCOMPS + 3       # 18
SHAPE_DIM = 10
N_JOINTS = 21
JOINTS_DIM = N_JOINTS * 3   # 63
ST_HIDDEN = F // 2          # AbsoluteBranch hidden (64)
ATLAS_PTS = 42              # ico division 1
ATLAS_PTS_PAD = 48          # padded to a multiple of 8 sublanes
ATLAS_HID = 64
OUT_FACTOR = 100.0          # cfg.ATLAS.OUT_FACTOR

HEAD_W = 128                # lane-dense packed output width
# packed head-slab column layout: [pose | shape | joints_flat | scaletrans | 0-pad]
POSE_OFF = 0
SHAPE_OFF = POSE_OFF + POSE_DIM          # 18
JOINTS_OFF = SHAPE_OFF + SHAPE_DIM       # 28
ST_OFF = JOINTS_OFF + JOINTS_DIM         # 91  (91:94 = scaletrans)

FUSED_ORDER = (
    "enc_w", "enc_b",
    "w_fs", "b_fs",
    "m_w2", "m_b2",
    "w_a", "w_b", "b_ab",
    "w_jxy", "b_jxy",
    "ad_w", "ad_b",
    "a_wf", "hf_sel", "hp_tiled",
    "a_w2", "a_b2", "a_w3", "a_b3",
)


# ----------------------------- the single fused kernel -------------------------------
def handnet_kernel(
    img_ref,                     # (B, C*H*W)
    enc_w_ref, enc_b_ref,        # (C*H*W, F), (1, F)   -- avg-pool folded into weight
    w_fs_ref, b_fs_ref,          # (F, N1+ST_HIDDEN)    -- [mano layer1 | scaletrans layer1]
    m_w2_ref, m_b2_ref,          # (N1, N2)
    w_a_ref, w_b_ref, b_ab_ref,  # (N2, 128), (ST_HIDDEN, 128), (1, 128) packed heads
    w_jxy_ref, b_jxy_ref,        # (N2, 128) xy-rearranged joint head (first 42 cols)
    ad_w_ref, ad_b_ref,          # (F, F)               -- atlas_adapter
    a_wf_ref,                    # (F, ATLAS_HID)
    hf_sel_ref, hp_tiled_ref,    # (B*P_pad, B), (B*P_pad, ATLAS_HID)  -- constants
    a_w2_ref, a_b2_ref,          # (ATLAS_HID, ATLAS_HID)
    a_w3_ref, a_b3_ref,          # (ATLAS_HID, 128) padded xyz head
    feat_ref,                    # out: (B, F)
    head_ref,                    # out: (B, 128)  pose|shape|joints|scaletrans|pad
    j2d_ref,                     # out: (B, 128)  joints2d (42 cols) | pad
    atlas_ref,                   # out: (B*P_pad, 128)  xyz in cols 0:3
):
    f32 = jnp.float32

    # ---- encoder (ResNet18 surrogate): mean-pool folded into expanded weight --------
    features = jnp.maximum(
        jnp.dot(img_ref[...], enc_w_ref[...], preferred_element_type=f32)
        + enc_b_ref[...], 0.0)                                          # (B, F)
    feat_ref[...] = features

    # ---- mano layer 1 + scaletrans layer 1 fused into one matmul --------------------
    h_both = jnp.maximum(
        jnp.dot(features, w_fs_ref[...], preferred_element_type=f32)
        + b_fs_ref[...], 0.0)                                           # (B, N1+STH)
    h1 = h_both[:, :MANO_NEURONS[0]]                                    # (B, N1)
    h_st = h_both[:, MANO_NEURONS[0]:]                                  # (B, STH)

    # ---- mano layer 2 (dropout is an inference no-op) --------------------------------
    h_mano = jnp.maximum(
        jnp.dot(h1, m_w2_ref[...], preferred_element_type=f32)
        + m_b2_ref[...], 0.0)                                           # (B, N2)

    # ---- all narrow heads packed into one lane-dense 128-wide slab -------------------
    head = (jnp.dot(h_mano, w_a_ref[...], preferred_element_type=f32)
            + jnp.dot(h_st, w_b_ref[...], preferred_element_type=f32)
            + b_ab_ref[...])                                            # (B, 128)
    head_ref[...] = head

    # ---- joints2d projection fused in-kernel ------------------------------------------
    # scale = |scaletrans[:, 0:1]|, trans = scaletrans[:, 1:3]
    scale = jnp.abs(head[:, ST_OFF:ST_OFF + 1])                         # (B, 1)
    tx = head[:, ST_OFF + 1:ST_OFF + 2]                                 # (B, 1)
    ty = head[:, ST_OFF + 2:ST_OFF + 3]                                 # (B, 1)
    jxy = (jnp.dot(h_mano, w_jxy_ref[...], preferred_element_type=f32)
           + b_jxy_ref[...])                                            # (B, 128)
    col = jax.lax.broadcasted_iota(jnp.int32, jxy.shape, 1)
    in_j = col < 2 * N_JOINTS
    is_x = (col & 1) == 0
    trans_sel = jnp.where(is_x, tx, ty)                                 # (B, 128)
    j2d_ref[...] = jnp.where(in_j, jxy * scale + 100.0 * trans_sel, 0.0)

    # ---- atlas adapter + AtlasNet decoder (flattened to 2D matmuls) ------------------
    atlas_feat = (jnp.dot(features, ad_w_ref[...], preferred_element_type=f32)
                  + ad_b_ref[...])                                      # (B, F)
    hf = jnp.dot(atlas_feat, a_wf_ref[...], preferred_element_type=f32)  # (B, HID)
    # hp_tiled = (sphere_pts @ a_wp + a_b1) tiled per batch (precomputed constant);
    # hf_sel is a (B*P_pad, B) one-hot selector so h_in[b*P+p] = hf[b] + hp[p].
    h_in = jnp.maximum(
        jnp.dot(hf_sel_ref[...], hf, preferred_element_type=f32)
        + hp_tiled_ref[...], 0.0)                                       # (B*P_pad, HID)
    h2 = jnp.maximum(
        jnp.dot(h_in, a_w2_ref[...], preferred_element_type=f32)
        + a_b2_ref[...], 0.0)                                           # (B*P_pad, HID)
    atlas_ref[...] = OUT_FACTOR * jnp.tanh(
        jnp.dot(h2, a_w3_ref[...], preferred_element_type=f32) + a_b3_ref[...])


# ----------------------------- parameter init (deterministic) ------------------------
def init_params(key):
    def dense(k, din, dout, scale=0.05):
        kw, kb = jax.random.split(k)
        w = scale * jax.random.normal(kw, (din, dout), jnp.float32)
        b = scale * jax.random.normal(kb, (1, dout), jnp.float32)
        return w, b

    keys = jax.random.split(key, 16)
    p = {}
    # stand-in encoder
    p["enc_w"], p["enc_b"] = dense(keys[0], C, F)
    # mano branch
    p["m_w1"], p["m_b1"] = dense(keys[1], F, MANO_NEURONS[0])
    p["m_w2"], p["m_b2"] = dense(keys[2], MANO_NEURONS[0], MANO_NEURONS[1])
    p["m_wp"], p["m_bp"] = dense(keys[3], MANO_NEURONS[1], POSE_DIM)
    p["m_ws"], p["m_bs"] = dense(keys[4], MANO_NEURONS[1], SHAPE_DIM)
    p["m_wj"], p["m_bj"] = dense(keys[5], MANO_NEURONS[1], JOINTS_DIM)
    # scaletrans branch (AbsoluteBranch)
    p["st_w1"], p["st_b1"] = dense(keys[6], F, ST_HIDDEN)
    p["st_w2"], p["st_b2"] = dense(keys[7], ST_HIDDEN, 3)
    # atlas adapter + decoder
    p["ad_w"], p["ad_b"] = dense(keys[8], F, F)
    p["a_wf"], _ = dense(keys[9], F, ATLAS_HID)
    p["a_wp"], p["a_b1"] = dense(keys[10], 3, ATLAS_HID)
    p["a_w2"], p["a_b2"] = dense(keys[11], ATLAS_HID, ATLAS_HID)
    p["a_w3"], p["a_b3"] = dense(keys[12], ATLAS_HID, 3)
    return p


def fibonacci_sphere(n):
    i = np.arange(n, dtype=np.float64)
    phi = np.pi * (3.0 - np.sqrt(5.0))
    y = 1.0 - 2.0 * (i + 0.5) / n
    r = np.sqrt(np.maximum(0.0, 1.0 - y * y))
    theta = phi * i
    pts = np.stack([r * np.cos(theta), y, r * np.sin(theta)], axis=-1)
    return jnp.asarray(pts, jnp.float32)


# ----------------------------- host-side weight packing (once at init) ---------------
def prepare_fused_params(params, sphere_pts):
    p = {k: np.asarray(v, np.float32) for k, v in params.items()}
    hw = H * W
    n1, n2 = MANO_NEURONS

    # encoder: fold the global average pool into the weight
    enc_w_exp = np.repeat(p["enc_w"], hw, axis=0) / float(hw)           # (C*HW, F)

    # first mano layer and scaletrans hidden layer share one matmul
    w_fs = np.concatenate([p["m_w1"], p["st_w1"]], axis=1)              # (F, n1+STH)
    b_fs = np.concatenate([p["m_b1"], p["st_b1"]], axis=1)              # (1, n1+STH)

    # lane-dense head slab:  pose | shape | joints | scaletrans | 0-pad
    w_a = np.zeros((n2, HEAD_W), np.float32)
    w_a[:, POSE_OFF:POSE_OFF + POSE_DIM] = p["m_wp"]
    w_a[:, SHAPE_OFF:SHAPE_OFF + SHAPE_DIM] = p["m_ws"]
    w_a[:, JOINTS_OFF:JOINTS_OFF + JOINTS_DIM] = p["m_wj"]
    w_b = np.zeros((ST_HIDDEN, HEAD_W), np.float32)
    w_b[:, ST_OFF:ST_OFF + 3] = p["st_w2"]
    b_ab = np.zeros((1, HEAD_W), np.float32)
    b_ab[:, POSE_OFF:POSE_OFF + POSE_DIM] = p["m_bp"]
    b_ab[:, SHAPE_OFF:SHAPE_OFF + SHAPE_DIM] = p["m_bs"]
    b_ab[:, JOINTS_OFF:JOINTS_OFF + JOINTS_DIM] = p["m_bj"]
    b_ab[:, ST_OFF:ST_OFF + 3] = p["st_b2"]

    # xy-rearranged joint head for the fused joints2d projection
    xy_cols = np.arange(JOINTS_DIM).reshape(N_JOINTS, 3)[:, :2].reshape(-1)
    w_jxy = np.zeros((n2, HEAD_W), np.float32)
    w_jxy[:, :2 * N_JOINTS] = p["m_wj"][:, xy_cols]
    b_jxy = np.zeros((1, HEAD_W), np.float32)
    b_jxy[:, :2 * N_JOINTS] = p["m_bj"][:, xy_cols]

    # atlas: hoist the constant sphere-point projection out of the kernel
    pts_pad = np.zeros((ATLAS_PTS_PAD, 3), np.float32)
    pts_pad[:ATLAS_PTS] = np.asarray(sphere_pts, np.float32)
    hp = pts_pad @ p["a_wp"] + p["a_b1"]                                # (P_pad, HID)
    hp_tiled = np.tile(hp, (B, 1))                                      # (B*P_pad, HID)
    hf_sel = np.kron(np.eye(B, dtype=np.float32),
                     np.ones((ATLAS_PTS_PAD, 1), np.float32))           # (B*P_pad, B)

    # pad the atlas xyz head to a lane-dense 128-wide slab
    a_w3p = np.zeros((ATLAS_HID, HEAD_W), np.float32)
    a_w3p[:, :3] = p["a_w3"]
    a_b3p = np.zeros((1, HEAD_W), np.float32)
    a_b3p[:, :3] = p["a_b3"]

    fused = dict(
        enc_w=enc_w_exp, enc_b=p["enc_b"],
        w_fs=w_fs, b_fs=b_fs,
        m_w2=p["m_w2"], m_b2=p["m_b2"],
        w_a=w_a, w_b=w_b, b_ab=b_ab,
        w_jxy=w_jxy, b_jxy=b_jxy,
        ad_w=p["ad_w"], ad_b=p["ad_b"],
        a_wf=p["a_wf"], hf_sel=hf_sel, hp_tiled=hp_tiled,
        a_w2=p["a_w2"], a_b2=p["a_b2"], a_w3=a_w3p, a_b3=a_b3p,
    )
    return {k: jnp.asarray(v) for k, v in fused.items()}


# ----------------------------- HandNet forward (one jit, one pallas_call) ------------
@jax.jit
def handnet_forward(image, fused):
    img2d = image.reshape(B, C * H * W)
    args = [img2d] + [fused[k] for k in FUSED_ORDER]

    out_shape = (
        jax.ShapeDtypeStruct((B, F), jnp.float32),                    # features
        jax.ShapeDtypeStruct((B, HEAD_W), jnp.float32),               # packed heads
        jax.ShapeDtypeStruct((B, HEAD_W), jnp.float32),               # joints2d slab
        jax.ShapeDtypeStruct((B * ATLAS_PTS_PAD, HEAD_W), jnp.float32),  # atlas slab
    )
    vmem = pltpu.MemorySpace.VMEM
    features, head, j2d, atlas = pl.pallas_call(
        handnet_kernel,
        in_specs=[pl.BlockSpec(memory_space=vmem) for _ in args],
        out_specs=tuple(pl.BlockSpec(memory_space=vmem) for _ in out_shape),
        out_shape=out_shape,
    )(*args)

    # cheap slicing / reshaping glue (fused by XLA under this jit)
    pose = head[:, POSE_OFF:POSE_OFF + POSE_DIM]
    shape = head[:, SHAPE_OFF:SHAPE_OFF + SHAPE_DIM]
    joints = head[:, JOINTS_OFF:JOINTS_OFF + JOINTS_DIM].reshape(B, N_JOINTS, 3)
    joints2d = j2d[:, :2 * N_JOINTS].reshape(B, N_JOINTS, 2)
    objpoints3d = atlas[:, :3].reshape(B, ATLAS_PTS_PAD, 3)[:, :ATLAS_PTS, :]

    return {
        "img_features": features,
        "mano_results": {"pose": pose, "shape": shape, "joints": joints},
        "joints2d": joints2d,
        "atlas_results": {"objpoints3d": objpoints3d},
        # TODO(synk): 'obj_utils' (faces / loss modules) are bookkeeping, not compute.
    }


# ----------------------------- pure-JAX reference (for verification) -----------------
def handnet_reference(image, params, sphere_pts):
    img = image.reshape(B, C, H * W)
    pooled = jnp.mean(img, axis=-1)
    features = jax.nn.relu(pooled @ params["enc_w"] + params["enc_b"])
    h1 = jax.nn.relu(features @ params["m_w1"] + params["m_b1"])
    h2 = jax.nn.relu(h1 @ params["m_w2"] + params["m_b2"])
    pose = h2 @ params["m_wp"] + params["m_bp"]
    shape = h2 @ params["m_ws"] + params["m_bs"]
    joints = (h2 @ params["m_wj"] + params["m_bj"]).reshape(B, N_JOINTS, 3)
    h_st = jax.nn.relu(features @ params["st_w1"] + params["st_b1"])
    st = h_st @ params["st_w2"] + params["st_b2"]
    scale = jnp.abs(st[:, 0:1])
    trans = st[:, 1:3]
    joints2d = joints[:, :, :2] * scale[:, None, :] + 100.0 * trans[:, None, :]
    af = features @ params["ad_w"] + params["ad_b"]
    hf = af @ params["a_wf"]
    hp = sphere_pts @ params["a_wp"] + params["a_b1"]
    hh = jax.nn.relu(hf[:, None, :] + hp[None, :, :])
    hh = jax.nn.relu(hh @ params["a_w2"] + params["a_b2"])
    obj = OUT_FACTOR * jnp.tanh(hh @ params["a_w3"] + params["a_b3"])
    return {
        "img_features": features,
        "pose": pose, "shape": shape, "joints": joints,
        "joints2d": joints2d, "objpoints3d": obj,
    }


# ----------------------------- main ---------------------------------------------------
if __name__ == "__main__":
    key = jax.random.PRNGKey(0)
    k_img, k_par = jax.random.split(key)
    image = jax.random.normal(k_img, (B, C, H, W), jnp.float32)       # NCHW like PyTorch
    params = init_params(k_par)
    sphere_pts = fibonacci_sphere(ATLAS_PTS)
    fused = prepare_fused_params(params, sphere_pts)

    results = handnet_forward(image, fused)
    results = jax.block_until_ready(results)

    # shape checks
    assert results["img_features"].shape == (B, F)
    assert results["mano_results"]["pose"].shape == (B, POSE_DIM)
    assert results["mano_results"]["shape"].shape == (B, SHAPE_DIM)
    assert results["mano_results"]["joints"].shape == (B, N_JOINTS, 3)
    assert results["joints2d"].shape == (B, N_JOINTS, 2)
    assert results["atlas_results"]["objpoints3d"].shape == (B, ATLAS_PTS, 3)

    # numerical check against a pure-JAX reference (loose tol: MXU default precision)
    ref = handnet_reference(image, params, sphere_pts)
    checks = [
        ("img_features", results["img_features"], ref["img_features"]),
        ("pose", results["mano_results"]["pose"], ref["pose"]),
        ("shape", results["mano_results"]["shape"], ref["shape"]),
        ("joints", results["mano_results"]["joints"], ref["joints"]),
        ("joints2d", results["joints2d"], ref["joints2d"]),
        ("objpoints3d", results["atlas_results"]["objpoints3d"], ref["objpoints3d"]),
    ]
    for name, got, want in checks:
        np.testing.assert_allclose(np.asarray(got), np.asarray(want),
                                   rtol=2e-2, atol=2e-2, err_msg=name)

    print("KERNEL_OK")
</pallas_src>

<mosaic_0001>
module attributes {stable_mosaic.version = 11 : i64} {
  func.func @handnet_kernel(%arg0: memref<2x1024xf32, #tpu.memory_space<vmem>>, %arg1: memref<1024x128xf32, #tpu.memory_space<vmem>>, %arg2: memref<1x128xf32, #tpu.memory_space<vmem>>, %arg3: memref<128x128xf32, #tpu.memory_space<vmem>>, %arg4: memref<1x128xf32, #tpu.memory_space<vmem>>, %arg5: memref<64x64xf32, #tpu.memory_space<vmem>>, %arg6: memref<1x64xf32, #tpu.memory_space<vmem>>, %arg7: memref<64x128xf32, #tpu.memory_space<vmem>>, %arg8: memref<64x128xf32, #tpu.memory_space<vmem>>, %arg9: memref<1x128xf32, #tpu.memory_space<vmem>>, %arg10: memref<64x128xf32, #tpu.memory_space<vmem>>, %arg11: memref<1x128xf32, #tpu.memory_space<vmem>>, %arg12: memref<128x128xf32, #tpu.memory_space<vmem>>, %arg13: memref<1x128xf32, #tpu.memory_space<vmem>>, %arg14: memref<128x64xf32, #tpu.memory_space<vmem>>, %arg15: memref<96x2xf32, #tpu.memory_space<vmem>>, %arg16: memref<96x64xf32, #tpu.memory_space<vmem>>, %arg17: memref<64x64xf32, #tpu.memory_space<vmem>>, %arg18: memref<1x64xf32, #tpu.memory_space<vmem>>, %arg19: memref<64x128xf32, #tpu.memory_space<vmem>>, %arg20: memref<1x128xf32, #tpu.memory_space<vmem>>, %arg21: memref<2x128xf32, #tpu.memory_space<vmem>>, %arg22: memref<2x128xf32, #tpu.memory_space<vmem>>, %arg23: memref<2x128xf32, #tpu.memory_space<vmem>>, %arg24: memref<96x128xf32, #tpu.memory_space<vmem>>) attributes {dimension_semantics = [], scalar_prefetch = 0 : i64, scratch_operands = 0 : i64, tpu.core_type = #tpu.core_type<tc>} {
    %c0 = arith.constant 0 : index
    %c0_0 = arith.constant 0 : index
    %0 = vector.load %arg0[%c0, %c0_0] : memref<2x1024xf32, #tpu.memory_space<vmem>>, vector<2x1024xf32>
    %c0_1 = arith.constant 0 : index
    %c0_2 = arith.constant 0 : index
    %1 = vector.load %arg1[%c0_1, %c0_2] : memref<1024x128xf32, #tpu.memory_space<vmem>>, vector<1024x128xf32>
    %cst = arith.constant dense<0.000000e+00> : vector<2x128xf32>
    %2 = tpu.matmul %0, %1, %cst {dimension_numbers = #tpu.dot_dimension_numbers<[1], [0], [0], [1], [0, 0, 1, 1], [], []>} : vector<2x1024xf32>, vector<1024x128xf32>, vector<2x128xf32> -> vector<2x128xf32>
    %c0_3 = arith.constant 0 : index
    %c0_4 = arith.constant 0 : index
    %3 = vector.load %arg2[%c0_3, %c0_4] : memref<1x128xf32, #tpu.memory_space<vmem>>, vector<1x128xf32>
    %4 = vector.broadcast %3 : vector<1x128xf32> to vector<2x128xf32>
    %5 = arith.addf %2, %4 : vector<2x128xf32>
    %cst_5 = arith.constant 0.000000e+00 : f32
    %6 = vector.broadcast %cst_5 : f32 to vector<2x128xf32>
    %7 = arith.maximumf %5, %6 : vector<2x128xf32>
    %c0_6 = arith.constant 0 : index
    %c0_7 = arith.constant 0 : index
    %8 = vector.load %arg21[%c0_6, %c0_7] : memref<2x128xf32, #tpu.memory_space<vmem>>, vector<2x128xf32>
    tpu.vector_store %arg21[%c0_6, %c0_7], %7 {strides = array<i32>} : memref<2x128xf32, #tpu.memory_space<vmem>>, vector<2x128xf32>,
    %c0_8 = arith.constant 0 : index
    %c0_9 = arith.constant 0 : index
    %9 = vector.load %arg3[%c0_8, %c0_9] : memref<128x128xf32, #tpu.memory_space<vmem>>, vector<128x128xf32>
    %cst_10 = arith.constant dense<0.000000e+00> : vector<2x128xf32>
    %10 = tpu.matmul %7, %9, %cst_10 {dimension_numbers = #tpu.dot_dimension_numbers<[1], [0], [0], [1], [0, 0, 1, 1], [], []>} : vector<2x128xf32>, vector<128x128xf32>, vector<2x128xf32> -> vector<2x128xf32>
    %c0_11 = arith.constant 0 : index
    %c0_12 = arith.constant 0 : index
    %11 = vector.load %arg4[%c0_11, %c0_12] : memref<1x128xf32, #tpu.memory_space<vmem>>, vector<1x128xf32>
    %12 = vector.broadcast %11 : vector<1x128xf32> to vector<2x128xf32>
    %13 = arith.addf %10, %12 : vector<2x128xf32>
    %cst_13 = arith.constant 0.000000e+00 : f32
    %14 = vector.broadcast %cst_13 : f32 to vector<2x128xf32>
    %15 = arith.maximumf %13, %14 : vector<2x128xf32>
    %16 = vector.extract_strided_slice %15 {offsets = [0, 0], sizes = [2, 64], strides = [1, 1]} : vector<2x128xf32> to vector<2x64xf32>
    %17 = vector.extract_strided_slice %15 {offsets = [0, 64], sizes = [2, 64], strides = [1, 1]} : vector<2x128xf32> to vector<2x64xf32>
    %c0_14 = arith.constant 0 : index
    %c0_15 = arith.constant 0 : index
    %18 = vector.load %arg5[%c0_14, %c0_15] : memref<64x64xf32, #tpu.memory_space<vmem>>, vector<64x64xf32>
    %cst_16 = arith.constant dense<0.000000e+00> : vector<2x64xf32>
    %19 = tpu.matmul %16, %18, %cst_16 {dimension_numbers = #tpu.dot_dimension_numbers<[1], [0], [0], [1], [0, 0, 1, 1], [], []>} : vector<2x64xf32>, vector<64x64xf32>, vector<2x64xf32> -> vector<2x64xf32>
    %c0_17 = arith.constant 0 : index
    %c0_18 = arith.constant 0 : index
    %20 = vector.load %arg6[%c0_17, %c0_18] : memref<1x64xf32, #tpu.memory_space<vmem>>, vector<1x64xf32>
    %21 = vector.broadcast %20 : vector<1x64xf32> to vector<2x64xf32>
    %22 = arith.addf %19, %21 : vector<2x64xf32>
    %cst_19 = arith.constant 0.000000e+00 : f32
    %23 = vector.broadcast %cst_19 : f32 to vector<2x64xf32>
    %24 = arith.maximumf %22, %23 : vector<2x64xf32>
    %c0_20 = arith.constant 0 : index
    %c0_21 = arith.constant 0 : index
    %25 = vector.load %arg7[%c0_20, %c0_21] : memref<64x128xf32, #tpu.memory_space<vmem>>, vector<64x128xf32>
    %cst_22 = arith.constant dense<0.000000e+00> : vector<2x128xf32>
    %26 = tpu.matmul %24, %25, %cst_22 {dimension_numbers = #tpu.dot_dimension_numbers<[1], [0], [0], [1], [0, 0, 1, 1], [], []>} : vector<2x64xf32>, vector<64x128xf32>, vector<2x128xf32> -> vector<2x128xf32>
    %c0_23 = arith.constant 0 : index
    %c0_24 = arith.constant 0 : index
    %27 = vector.load %arg8[%c0_23, %c0_24] : memref<64x128xf32, #tpu.memory_space<vmem>>, vector<64x128xf32>
    %cst_25 = arith.constant dense<0.000000e+00> : vector<2x128xf32>
    %28 = tpu.matmul %17, %27, %cst_25 {dimension_numbers = #tpu.dot_dimension_numbers<[1], [0], [0], [1], [0, 0, 1, 1], [], []>} : vector<2x64xf32>, vector<64x128xf32>, vector<2x128xf32> -> vector<2x128xf32>
    %29 = arith.addf %26, %28 : vector<2x128xf32>
    %c0_26 = arith.constant 0 : index
    %c0_27 = arith.constant 0 : index
    %30 = vector.load %arg9[%c0_26, %c0_27] : memref<1x128xf32, #tpu.memory_space<vmem>>, vector<1x128xf32>
    %31 = vector.broadcast %30 : vector<1x128xf32> to vector<2x128xf32>
    %32 = arith.addf %29, %31 : vector<2x128xf32>
    %c0_28 = arith.constant 0 : index
    %c0_29 = arith.constant 0 : index
    %33 = vector.load %arg22[%c0_28, %c0_29] : memref<2x128xf32, #tpu.memory_space<vmem>>, vector<2x128xf32>
    tpu.vector_store %arg22[%c0_28, %c0_29], %32 {strides = array<i32>} : memref<2x128xf32, #tpu.memory_space<vmem>>, vector<2x128xf32>,
    %34 = vector.extract_strided_slice %32 {offsets = [0, 91], sizes = [2, 1], strides = [1, 1]} : vector<2x128xf32> to vector<2x1xf32>
    %35 = math.absf %34 : vector<2x1xf32>
    %36 = vector.extract_strided_slice %32 {offsets = [0, 92], sizes = [2, 1], strides = [1, 1]} : vector<2x128xf32> to vector<2x1xf32>
    %37 = vector.extract_strided_slice %32 {offsets = [0, 93], sizes = [2, 1], strides = [1, 1]} : vector<2x128xf32> to vector<2x1xf32>
    %c0_30 = arith.constant 0 : index
    %c0_31 = arith.constant 0 : index
    %38 = vector.load %arg10[%c0_30, %c0_31] : memref<64x128xf32, #tpu.memory_space<vmem>>, vector<64x128xf32>
    %cst_32 = arith.constant dense<0.000000e+00> : vector<2x128xf32>
    %39 = tpu.matmul %24, %38, %cst_32 {dimension_numbers = #tpu.dot_dimension_numbers<[1], [0], [0], [1], [0, 0, 1, 1], [], []>} : vector<2x64xf32>, vector<64x128xf32>, vector<2x128xf32> -> vector<2x128xf32>
    %c0_33 = arith.constant 0 : index
    %c0_34 = arith.constant 0 : index
    %40 = vector.load %arg11[%c0_33, %c0_34] : memref<1x128xf32, #tpu.memory_space<vmem>>, vector<1x128xf32>
    %41 = vector.broadcast %40 : vector<1x128xf32> to vector<2x128xf32>
    %42 = arith.addf %39, %41 : vector<2x128xf32>
    %43 = tpu.iota {dimensions = array<i32: 1>} : vector<2x128xi32>
    %c42_i32 = arith.constant 42 : i32
    %44 = vector.broadcast %c42_i32 : i32 to vector<2x128xi32>
    %45 = arith.cmpi slt, %43, %44 : vector<2x128xi32>
    %c1_i32 = arith.constant 1 : i32
    %46 = vector.broadcast %c1_i32 : i32 to vector<2x128xi32>
    %47 = arith.andi %43, %46 : vector<2x128xi32>
    %c0_i32 = arith.constant 0 : i32
    %48 = vector.broadcast %c0_i32 : i32 to vector<2x128xi32>
    %49 = arith.cmpi eq, %47, %48 : vector<2x128xi32>
    %50 = vector.shape_cast %36 : vector<2x1xf32> to vector<2x1xf32>
    %51 = vector.broadcast %50 : vector<2x1xf32> to vector<2x128xf32>
    %52 = vector.shape_cast %37 : vector<2x1xf32> to vector<2x1xf32>
    %53 = vector.broadcast %52 : vector<2x1xf32> to vector<2x128xf32>
    %54 = arith.select %49, %51, %53 : vector<2x128xi1>, vector<2x128xf32>
    %55 = vector.broadcast %35 : vector<2x1xf32> to vector<2x128xf32>
    %56 = arith.mulf %42, %55 : vector<2x128xf32>
    %cst_35 = arith.constant 1.000000e+02 : f32
    %57 = vector.broadcast %cst_35 : f32 to vector<2x128xf32>
    %58 = arith.mulf %57, %54 : vector<2x128xf32>
    %59 = arith.addf %56, %58 : vector<2x128xf32>
    %cst_36 = arith.constant 0.000000e+00 : f32
    %60 = vector.broadcast %cst_36 : f32 to vector<2x128xf32>
    %61 = arith.select %45, %59, %60 : vector<2x128xi1>, vector<2x128xf32>
    %c0_37 = arith.constant 0 : index
    %c0_38 = arith.constant 0 : index
    %62 = vector.load %arg23[%c0_37, %c0_38] : memref<2x128xf32, #tpu.memory_space<vmem>>, vector<2x128xf32>
    tpu.vector_store %arg23[%c0_37, %c0_38], %61 {strides = array<i32>} : memref<2x128xf32, #tpu.memory_space<vmem>>, vector<2x128xf32>,
    %c0_39 = arith.constant 0 : index
    %c0_40 = arith.constant 0 : index
    %63 = vector.load %arg12[%c0_39, %c0_40] : memref<128x128xf32, #tpu.memory_space<vmem>>, vector<128x128xf32>
    %cst_41 = arith.constant dense<0.000000e+00> : vector<2x128xf32>
    %64 = tpu.matmul %7, %63, %cst_41 {dimension_numbers = #tpu.dot_dimension_numbers<[1], [0], [0], [1], [0, 0, 1, 1], [], []>} : vector<2x128xf32>, vector<128x128xf32>, vector<2x128xf32> -> vector<2x128xf32>
    %c0_42 = arith.constant 0 : index
    %c0_43 = arith.constant 0 : index
    %65 = vector.load %arg13[%c0_42, %c0_43] : memref<1x128xf32, #tpu.memory_space<vmem>>, vector<1x128xf32>
    %66 = vector.broadcast %65 : vector<1x128xf32> to vector<2x128xf32>
    %67 = arith.addf %64, %66 : vector<2x128xf32>
    %c0_44 = arith.constant 0 : index
    %c0_45 = arith.constant 0 : index
    %68 = vector.load %arg14[%c0_44, %c0_45] : memref<128x64xf32, #tpu.memory_space<vmem>>, vector<128x64xf32>
    %cst_46 = arith.constant dense<0.000000e+00> : vector<2x64xf32>
    %69 = tpu.matmul %67, %68, %cst_46 {dimension_numbers = #tpu.dot_dimension_numbers<[1], [0], [0], [1], [0, 0, 1, 1], [], []>} : vector<2x128xf32>, vector<128x64xf32>, vector<2x64xf32> -> vector<2x64xf32>
    %c0_47 = arith.constant 0 : index
    %c0_48 = arith.constant 0 : index
    %70 = vector.load %arg15[%c0_47, %c0_48] : memref<96x2xf32, #tpu.memory_space<vmem>>, vector<96x2xf32>
    %cst_49 = arith.constant dense<0.000000e+00> : vector<96x64xf32>
    %71 = tpu.matmul %70, %69, %cst_49 {dimension_numbers = #tpu.dot_dimension_numbers<[1], [0], [0], [1], [0, 0, 1, 1], [], []>} : vector<96x2xf32>, vector<2x64xf32>, vector<96x64xf32> -> vector<96x64xf32>
    %c0_50 = arith.constant 0 : index
    %c0_51 = arith.constant 0 : index
    %72 = vector.load %arg16[%c0_50, %c0_51] : memref<96x64xf32, #tpu.memory_space<vmem>>, vector<96x64xf32>
    %73 = arith.addf %71, %72 : vector<96x64xf32>
    %cst_52 = arith.constant 0.000000e+00 : f32
    %74 = vector.broadcast %cst_52 : f32 to vector<96x64xf32>
    %75 = arith.maximumf %73, %74 : vector<96x64xf32>
    %c0_53 = arith.constant 0 : index
    %c0_54 = arith.constant 0 : index
    %76 = vector.load %arg17[%c0_53, %c0_54] : memref<64x64xf32, #tpu.memory_space<vmem>>, vector<64x64xf32>
    %cst_55 = arith.constant dense<0.000000e+00> : vector<96x64xf32>
    %77 = tpu.matmul %75, %76, %cst_55 {dimension_numbers = #tpu.dot_dimension_numbers<[1], [0], [0], [1], [0, 0, 1, 1], [], []>} : vector<96x64xf32>, vector<64x64xf32>, vector<96x64xf32> -> vector<96x64xf32>
    %c0_56 = arith.constant 0 : index
    %c0_57 = arith.constant 0 : index
    %78 = vector.load %arg18[%c0_56, %c0_57] : memref<1x64xf32, #tpu.memory_space<vmem>>, vector<1x64xf32>
    %79 = vector.broadcast %78 : vector<1x64xf32> to vector<96x64xf32>
    %80 = arith.addf %77, %79 : vector<96x64xf32>
    %cst_58 = arith.constant 0.000000e+00 : f32
    %81 = vector.broadcast %cst_58 : f32 to vector<96x64xf32>
    %82 = arith.maximumf %80, %81 : vector<96x64xf32>
    %c0_59 = arith.constant 0 : index
    %c0_60 = arith.constant 0 : index
    %83 = vector.load %arg19[%c0_59, %c0_60] : memref<64x128xf32, #tpu.memory_space<vmem>>, vector<64x128xf32>
    %cst_61 = arith.constant dense<0.000000e+00> : vector<96x128xf32>
    %84 = tpu.matmul %82, %83, %cst_61 {dimension_numbers = #tpu.dot_dimension_numbers<[1], [0], [0], [1], [0, 0, 1, 1], [], []>} : vector<96x64xf32>, vector<64x128xf32>, vector<96x128xf32> -> vector<96x128xf32>
    %c0_62 = arith.constant 0 : index
    %c0_63 = arith.constant 0 : index
    %85 = vector.load %arg20[%c0_62, %c0_63] : memref<1x128xf32, #tpu.memory_space<vmem>>, vector<1x128xf32>
    %86 = vector.broadcast %85 : vector<1x128xf32> to vector<96x128xf32>
    %87 = arith.addf %84, %86 : vector<96x128xf32>
    %88 = math.tanh %87 : vector<96x128xf32>
    %cst_64 = arith.constant 1.000000e+02 : f32
    %89 = vector.broadcast %cst_64 : f32 to vector<96x128xf32>
    %90 = arith.mulf %89, %88 : vector<96x128xf32>
    %c0_65 = arith.constant 0 : index
    %c0_66 = arith.constant 0 : index
    %91 = vector.load %arg24[%c0_65, %c0_66] : memref<96x128xf32, #tpu.memory_space<vmem>>, vector<96x128xf32>
    tpu.vector_store %arg24[%c0_65, %c0_66], %90 {strides = array<i32>} : memref<96x128xf32, #tpu.memory_space<vmem>>, vector<96x128xf32>,
    return
  }
}

</mosaic_0001>

<bundles_post_ra>
// kernel: handnet_forward.1
= control target key start
LH: loop header
LB: loop body
LE: loop exit
PB: predicated region body
PF: predicated region fallthrough
CT: control target
= control target key end

     0   :  { %s3293_s0 = inlined_call_operand.vmem [shape: f32[2,1024], index: 0, kind: input, shape index: {}]   ;;  %s3294_s1 = inlined_call_operand.hbm [shape: f32[1024,128], index: 1, kind: input, shape index: {}]   ;;  %s3295_s2 = inlined_call_operand.vmem [shape: f32[1,128], index: 2, kind: input, shape index: {}]   ;;  %s3296_s3 = inlined_call_operand.vmem [shape: f32[128,128], index: 3, kind: input, shape index: {}]   ;;  %s3297_s4 = inlined_call_operand.vmem [shape: f32[1,128], index: 4, kind: input, shape index: {}]   ;;  %s3298_s5 = inlined_call_operand.vmem [shape: f32[64,64], index: 5, kind: input, shape index: {}]   ;;  %s3299_s6 = inlined_call_operand.vmem [shape: f32[1,64], index: 6, kind: input, shape index: {}]   ;;  %s3300_s7 = inlined_call_operand.vmem [shape: f32[64,128], index: 7, kind: input, shape index: {}]   ;;  %s3301_s8 = inlined_call_operand.vmem [shape: f32[64,128], index: 8, kind: input, shape index: {}]   ;;  %s3302_s9 = inlined_call_operand.vmem [shape: f32[1,128], index: 9, kind: input, shape index: {}]   ;;  %s3303_s10 = inlined_call_operand.hbm [shape: f32[64,128], index: 10, kind: input, shape index: {}]   ;;  %s3304_s11 = inlined_call_operand.vmem [shape: f32[1,128], index: 11, kind: input, shape index: {}]   ;;  %s3305_s12 = inlined_call_operand.vmem [shape: f32[128,128], index: 12, kind: input, shape index: {}]   ;;  %s3306_s13 = inlined_call_operand.vmem [shape: f32[1,128], index: 13, kind: input, shape index: {}]   ;;  %s3307_s14 = inlined_call_operand.vmem [shape: f32[128,64], index: 14, kind: input, shape index: {}]   ;;  %s3308_s15 = inlined_call_operand.vmem [shape: f32[96,2], index: 15, kind: input, shape index: {}]   ;;  %s3309_s16 = inlined_call_operand.vmem [shape: f32[96,64], index: 16, kind: input, shape index: {}]   ;;  %s3310_s17 = inlined_call_operand.hbm [shape: f32[64,64], index: 17, kind: input, shape index: {}]   ;;  %s3311_s18 = inlined_call_operand.vmem [shape: f32[1,64], index: 18, kind: input, shape index: {}]   ;;  %s3312_s19 = inlined_call_operand.hbm [shape: f32[64,128], index: 19, kind: input, shape index: {}]   ;;  %s3313_s20 = inlined_call_operand.vmem [shape: f32[1,128], index: 20, kind: input, shape index: {}]   ;;  %s3314_s21 = inlined_call_operand.hbm [shape: f32[2,128], index: 21, kind: output, shape index: {0}]   ;;  %s3315_s22 = inlined_call_operand.vmem [shape: f32[2,128], index: 22, kind: output, shape index: {1}]   ;;  %s3316_s23 = inlined_call_operand.vmem [shape: f32[2,128], index: 23, kind: output, shape index: {2}]   ;;  %s3317_s24 = inlined_call_operand.vmem [shape: f32[96,128], index: 24, kind: output, shape index: {3}]  }
   0x1   :  { %3323 = sst [smem:[#allocation15_spill]] %s3293_s0 }
   0x2   :  { %3324 = sst [smem:[#allocation16_spill]] %s3294_s1 }
   0x3   :  { %3325 = sst [smem:[#allocation17_spill]] %s3295_s2 }
   0x4   :  { %3326 = sst [smem:[#allocation18_spill]] %s3296_s3 }
   0x5   :  { %3327 = sst [smem:[#allocation19_spill]] %s3297_s4 }
   0x6   :  { %3328 = sst [smem:[#allocation20_spill]] %s3298_s5 }
   0x7   :  { %3329 = sst [smem:[#allocation21_spill]] %s3299_s6 }
   0x8   :  { %3330 = sst [smem:[#allocation22_spill]] %s3300_s7 }
   0x9   :  { %3331 = sst [smem:[#allocation23_spill]] %s3301_s8 }
   0xa   :  { %30 = vsyncpa [#allocation3], 0 }
   0xb   :  { %31 = vsyncpa [#allocation6], 0 }
   0xc   :  { %32 = vsyncpa [#allocation9], 0 }
   0xd   :  { %33 = vsyncpa [#allocation4], 0  ;;  %s2620_s5 = smov [#allocation5]   ;;  %s2621_s27 = smov [#allocation2]  }
   0xe   :  { %s69_s26 = sshll.u32 %s2620_s5, 4  ;;  %s41_s28 = sshll.u32 %s2621_s27, 4  ;;  %s70_s26 = int_to_ptr.vmem [resolvable:$true] %s69_s26  ;;  %s42_s28 = int_to_ptr.vmem [resolvable:$true] %s41_s28 }
   0xf   :  { %s2520_s6 = scalar_lea.vmem %s70_s26, 1024  ;;  %p2525_p1 = scmp.lt.s32.totalorder %s70_s26, %s70_s26 }
  0x10   :  { %p2521_p0 = scmp.ne.s32.totalorder %s70_s26, %s2520_s6  ;;  %p2526_p2 = scmp.lt.s32.totalorder %s2520_s6, %s2520_s6 }
  0x12   :  { %p2527_p3 = por %p2526_p2, %p2525_p1 }
  0x14   :  { %p2528_p4 = pnand %p2527_p3, %p2521_p0 }
  0x16   :  { %2531 = shalt.err (!%p2528_p4)
}
  0x17   :  { %s2622_s2 = smov 128   ;;  %s2623_s29 = smov 8  }
  0x18   :  { %75 = dma.hbm_to_vmem [thread:$0]  %s3303_s10, 1024, %s70_s26, [#allocation6], %s2622_s2, %s2622_s2, %s2623_s29  }
  0x19   :  { %s2540_s30 = scalar_lea.vmem %s42_s28, 16384  ;;  %p2545_p6 = scmp.lt.s32.totalorder %s42_s28, %s42_s28 }
  0x1a   :  { %p2541_p5 = scmp.ne.s32.totalorder %s42_s28, %s2540_s30  ;;  %p2546_p7 = scmp.lt.s32.totalorder %s2540_s30, %s2540_s30 }
  0x1c   :  { %p2547_p8 = por %p2546_p7, %p2545_p6 }
  0x1e   :  { %p2548_p9 = pnand %p2547_p8, %p2541_p5 }
  0x20   :  { %2551 = shalt.err (!%p2548_p9)
}
  0x21   :  { %s3332_s8 = sld [smem:[#allocation16_spill]]  ;;  %s2624_s4 = smov [#allocation7]  }
  0x22   :  { %s93_s1 = sshll.u32 %s2624_s4, 4  ;;  %s2625_s5 = smov [#allocation8]   ;;  %s94_s1 = int_to_ptr.vmem [resolvable:$true] %s93_s1 }
  0x23   :  { %s107_s27 = sshll.u32 %s2625_s5, 4  ;;  %s2560_s10 = scalar_lea.vmem %s94_s1, 1024  ;;  %s108_s27 = int_to_ptr.vmem [resolvable:$true] %s107_s27 }
  0x24   :  { %p2561_p10 = scmp.ne.s32.totalorder %s94_s1, %s2560_s10  ;;  %p2565_p11 = scmp.lt.s32.totalorder %s94_s1, %s94_s1 }
  0x25   :  { %p2566_p12 = scmp.lt.s32.totalorder %s2560_s10, %s2560_s10 }
  0x27   :  { %47 = dma.hbm_to_vmem [thread:$0]  %s3332_s8, 16384, %s42_s28, [#allocation3], %s2622_s2, %s2622_s2, %s2623_s29  }
  0x28   :  { %p2567_p13 = por %p2566_p12, %p2565_p11 }
  0x2a   :  { %p2568_p0 = pnand %p2567_p13, %p2561_p10 }
  0x2c   :  { %2571 = shalt.err (!%p2568_p0)
}
  0x2d   :  { %99 = dma.hbm_to_vmem [thread:$0]  %s3310_s17, 1024, %s94_s1, [#allocation6], %s2622_s2, %s2622_s2, %s2623_s29  }
  0x2e   :  { %s2580_s28 = scalar_lea.vmem %s108_s27, 1024  ;;  %p2585_p2 = scmp.lt.s32.totalorder %s108_s27, %s108_s27 }
  0x2f   :  { %p2581_p1 = scmp.ne.s32.totalorder %s108_s27, %s2580_s28  ;;  %p2586_p3 = scmp.lt.s32.totalorder %s2580_s28, %s2580_s28 }
  0x31   :  { %p2587_p4 = por %p2586_p3, %p2585_p2 }
  0x33   :  { %p2588_p5 = pnand %p2587_p4, %p2581_p1 }
  0x35   :  { %2591 = shalt.err (!%p2588_p5)
}
  0x36   :  { %113 = dma.hbm_to_vmem [thread:$0]  %s3312_s19, 1024, %s108_s27, [#allocation9], %s2622_s2, %s2622_s2, %s2623_s29  }
  0x37   :  { %2612 = dma.done.wait [#allocation3], 16384  }
  0x38   :  { %2613 = vsyncadd [#allocation3], 4294950912 }
  0x39   :  { %2614 = dma.done.wait [#allocation6], 2048  }
  0x3a   :  { %2615 = vsyncadd [#allocation6], 4294965248 }
  0x3b   :  { %2616 = dma.done.wait [#allocation9], 1024  }
  0x3c   :  { %2617 = vsyncadd [#allocation9], 4294966272  ;;  %v161_v0 = vld [vmem:[#allocation2 + $0xf8] sm:$0xff]  ;;  %v160_v4 = vld [vmem:[#allocation2 + $0xf0] sm:$0xff]  ;;  %v2626_v30 = vmov 1983009808   ;;  %v271_v32 = vlaneseq }
  0x3d   :  { %v193_v1 = vld [vmem:[#allocation2 + $0x1f8] sm:$0xff]  ;;  %1917 = vmatprep.subr.mxu0 %v161_v0  ;;  %v192_v5 = vld [vmem:[#allocation2 + $0x1f0] sm:$0xff]  ;;  %v159_v8 = vld [vmem:[#allocation2 + $0xe8] sm:$0xff]  ;;  %v269_v31 = vunpack.c.l.s4 %v2626_v30  ;;  %s3333_s2 = sld [smem:[#allocation15_spill]]  ;;  %vm2628_vm0 = vmmov 0   ;;  %vm700_vm1 = vcmask 523264  }
  0x3e   :  { %v145_v2 = vld [vmem:[#allocation2 + $0x78] sm:$0xff]  ;;  %1952 = vmatprep.subr.mxu1 %v193_v1  ;;  %v144_v6 = vld [vmem:[#allocation2 + $0x70] sm:$0xff]  ;;  %v191_v9 = vld [vmem:[#allocation2 + $0x1e8] sm:$0xff]  ;;  %v272_v42 = vshrl.u32 %v271_v32, 7  ;;  %s3334_s8 = sld [smem:[#allocation18_spill]]  ;;  %s2629_s4 = smov 64  }
  0x3f   :  { %v177_v3 = vld [vmem:[#allocation2 + $0x178] sm:$0xff]  ;;  %1918 = vmatpush3.msra.mxu0 %v145_v2  ;;  %v176_v7 = vld [vmem:[#allocation2 + $0x170] sm:$0xff]  ;;  %v143_v10 = vld [vmem:[#allocation2 + $0x68] sm:$0xff]  ;;  %v270_v41 = vunpack.c.0.s8 %v269_v31  ;;  %s3335_s3 = sld [smem:[#allocation20_spill]]  ;;  %vm1261_vm2 = vcmask 15360   ;;  %vm1298_vm5 = vcmask 1041408  }
  0x40   :  { %1953 = vmatpush3.msra.mxu1 %v177_v3  ;;  %1919 = vmatprep.subr.mxu0 %v160_v4  ;;  %v175_v11 = vld [vmem:[#allocation2 + $0x168] sm:$0xff]  ;;  %v158_v12 = vld [vmem:[#allocation2 + $0xe0] sm:$0xff]  ;;  %v157_v16 = vld [vmem:[#allocation2 + $0xd8] sm:$0xff]  ;;  %s3336_s0 = sld [smem:[#allocation17_spill]] }
  0x41   :  { %1954 = vmatprep.subr.mxu1 %v192_v5  ;;  %1920 = vmatpush3.msra.mxu0 %v144_v6  ;;  %v190_v13 = vld [vmem:[#allocation2 + $0x1e0] sm:$0xff]  ;;  %v189_v17 = vld [vmem:[#allocation2 + $0x1d8] sm:$0xff]  ;;  %v156_v20 = vld [vmem:[#allocation2 + $0xd0] sm:$0xff]  ;;  %v2784_v51 = vsub.s32 %v270_v41, %v272_v42  ;;  %s3339_s25 = sld [smem:[#allocation23_spill]] }
  0x42   :  { %1955 = vmatpush3.msra.mxu1 %v176_v7  ;;  %1921 = vmatprep.subr.mxu0 %v159_v8  ;;  %v142_v14 = vld [vmem:[#allocation2 + $0x60] sm:$0xff]  ;;  %v141_v18 = vld [vmem:[#allocation2 + $0x58] sm:$0xff]  ;;  %v188_v21 = vld [vmem:[#allocation2 + $0x1d0] sm:$0xff]  ;;  %s3340_s27 = sld [smem:[#allocation21_spill]] }
  0x43   :  { %1956 = vmatprep.subr.mxu1 %v191_v9  ;;  %v174_v15 = vld [vmem:[#allocation2 + $0x160] sm:$0xff]  ;;  %1922 = vmatpush3.msra.mxu0 %v143_v10  ;;  %v173_v19 = vld [vmem:[#allocation2 + $0x158] sm:$0xff]  ;;  %v140_v22 = vld [vmem:[#allocation2 + $0x50] sm:$0xff] }
  0x44   :  { %1957 = vmatpush3.msra.mxu1 %v175_v11  ;;  %1923 = vmatprep.subr.mxu0 %v158_v12  ;;  %v172_v23 = vld [vmem:[#allocation2 + $0x150] sm:$0xff]  ;;  %v155_v24 = vld [vmem:[#allocation2 + $0xc8] sm:$0xff]  ;;  %v154_v28 = vld [vmem:[#allocation2 + $0xc0] sm:$0xff] }
  0x45   :  { %1958 = vmatprep.subr.mxu1 %v190_v13  ;;  %1924 = vmatpush3.msra.mxu0 %v142_v14  ;;  %v187_v25 = vld [vmem:[#allocation2 + $0x1c8] sm:$0xff]  ;;  %v186_v29 = vld [vmem:[#allocation2 + $0x1c0] sm:$0xff]  ;;  %v153_v35 = vld [vmem:[#allocation2 + $0xb8] sm:$0xff] }
  0x46   :  { %1959 = vmatpush3.msra.mxu1 %v174_v15  ;;  %1925 = vmatprep.subr.mxu0 %v157_v16  ;;  %v139_v26 = vld [vmem:[#allocation2 + $0x48] sm:$0xff]  ;;  %v138_v33 = vld [vmem:[#allocation2 + $0x40] sm:$0xff]  ;;  %v185_v36 = vld [vmem:[#allocation2 + $0x1b8] sm:$0xff] }
  0x47   :  { %1960 = vmatprep.subr.mxu1 %v189_v17  ;;  %1926 = vmatpush3.msra.mxu0 %v141_v18  ;;  %v171_v27 = vld [vmem:[#allocation2 + $0x148] sm:$0xff]  ;;  %v170_v34 = vld [vmem:[#allocation2 + $0x140] sm:$0xff]  ;;  %v137_v37 = vld [vmem:[#allocation2 + $0x38] sm:$0xff] }
  0x48   :  { %1961 = vmatpush3.msra.mxu1 %v173_v19  ;;  %1927 = vmatprep.subr.mxu0 %v156_v20  ;;  %v169_v38 = vld [vmem:[#allocation2 + $0x138] sm:$0xff]  ;;  %v152_v39 = vld [vmem:[#allocation2 + $0xb0] sm:$0xff]  ;;  %v151_v45 = vld [vmem:[#allocation2 + $0xa8] sm:$0xff] }
  0x49   :  { %1962 = vmatprep.subr.mxu1 %v188_v21  ;;  %1928 = vmatpush3.msra.mxu0 %v140_v22  ;;  %v184_v40 = vld [vmem:[#allocation2 + $0x1b0] sm:$0xff]  ;;  %v183_v46 = vld [vmem:[#allocation2 + $0x1a8] sm:$0xff]  ;;  %v150_v49 = vld [vmem:[#allocation2 + $0xa0] sm:$0xff] }
  0x4a   :  { %1963 = vmatpush3.msra.mxu1 %v172_v23  ;;  %1929 = vmatprep.subr.mxu0 %v155_v24  ;;  %v136_v43 = vld [vmem:[#allocation2 + $0x30] sm:$0xff]  ;;  %v135_v47 = vld [vmem:[#allocation2 + $0x28] sm:$0xff]  ;;  %v182_v50 = vld [vmem:[#allocation2 + $0x1a0] sm:$0xff] }
  0x4b   :  { %1964 = vmatprep.subr.mxu1 %v187_v25  ;;  %1930 = vmatpush3.msra.mxu0 %v139_v26  ;;  %v168_v44 = vld [vmem:[#allocation2 + $0x130] sm:$0xff]  ;;  %v167_v48 = vld [vmem:[#allocation2 + $0x128] sm:$0xff]  ;;  %v134_v52 = vld [vmem:[#allocation2 + $0x20] sm:$0xff] }
  0x4c   :  { %1965 = vmatpush3.msra.mxu1 %v171_v27  ;;  %1931 = vmatprep.subr.mxu0 %v154_v28  ;;  %v166_v53 = vld [vmem:[#allocation2 + $0x120] sm:$0xff]  ;;  %v149_v55 = vld [vmem:[#allocation2 + $0x98] sm:$0xff]  ;;  %v148_v60 = vld [vmem:[#allocation2 + $0x90] sm:$0xff] }
  0x4d   :  { %1966 = vmatprep.subr.mxu1 %v186_v29  ;;  %1932 = vmatpush3.msra.mxu0 %v138_v33  ;;  %v128_v54 = vld [vmem:[%s3333_s2] sm:$0xff]  ;;  %v181_v56 = vld [vmem:[#allocation2 + $0x198] sm:$0xff]  ;;  %v180_v61 = vld [vmem:[#allocation2 + $0x190] sm:$0xff] }
  0x4e   :  { %1967 = vmatpush3.msra.mxu1 %v170_v34  ;;  %1933 = vmatprep.subr.mxu0 %v153_v35  ;;  %v267_v57 = vcombine.high %v128_v54, %v128_v54  ;;  %v133_v58 = vld [vmem:[#allocation2 + $0x18] sm:$0xff]  ;;  %v274_v62 = vrot.slane %v128_v54, %v2784_v51  ;;  %v132_v63 = vld [vmem:[#allocation2 + $0x10] sm:$0xff]  ;;  %v147_v1 = vld [vmem:[#allocation2 + $0x88] sm:$0xff] }
  0x4f   :  { %1968 = vmatprep.subr.mxu1 %v185_v36  ;;  %1934 = vmatpush3.msra.mxu0 %v137_v37  ;;  %v165_v59 = vld [vmem:[#allocation2 + $0x118] sm:$0xff]  ;;  %v164_v0 = vld [vmem:[#allocation2 + $0x110] sm:$0xff]  ;;  %v179_v2 = vld [vmem:[#allocation2 + $0x188] sm:$0xff] }
  0x50   :  { %1969 = vmatpush3.msra.mxu1 %v169_v38  ;;  %1935 = vmatprep.subr.mxu0 %v152_v39  ;;  %v281_v3 = vrot.slane %v267_v57, %v2784_v51  ;;  %v131_v4 = vld [vmem:[#allocation2 + $0x8] sm:$0xff]  ;;  %v146_v6 = vld [vmem:[#allocation2 + $0x80] sm:$0xff]  ;;  %v282_v8 = vcombine.high %v274_v62, %v274_v62  ;;  %v225_v12 = vld [vmem:[#allocation2 + $0x2f8] sm:$0xff] }
  0x51   :  { %1970 = vmatprep.subr.mxu1 %v184_v40  ;;  %1936 = vmatpush3.msra.mxu0 %v136_v43  ;;  %v163_v5 = vld [vmem:[#allocation2 + $0x108] sm:$0xff]  ;;  %v178_v7 = vld [vmem:[#allocation2 + $0x180] sm:$0xff]  ;;  %v257_v13 = vld [vmem:[#allocation2 + $0x3f8] sm:$0xff] }
  0x52   :  { %1971 = vmatpush3.msra.mxu1 %v168_v44  ;;  %1937 = vmatprep.subr.mxu0 %v151_v45  ;;  %v130_v9 = vld [vmem:[#allocation2] sm:$0xff]  ;;  %v283_v11 = vcombine.high %v281_v3, %v281_v3  ;;  %v209_v14 = vld [vmem:[#allocation2 + $0x278] sm:$0xff]  ;;  %v224_v16 = vld [vmem:[#allocation2 + $0x2f0] sm:$0xff] }
  0x53   :  { %1972 = vmatprep.subr.mxu1 %v183_v46  ;;  %1938 = vmatpush3.msra.mxu0 %v135_v47  ;;  %v162_v10 = vld [vmem:[#allocation2 + $0x100] sm:$0xff]  ;;  %v241_v15 = vld [vmem:[#allocation2 + $0x378] sm:$0xff]  ;;  %v256_v17 = vld [vmem:[#allocation2 + $0x3f0] sm:$0xff] }
  0x54   :  { %1973 = vmatpush3.msra.mxu1 %v167_v48  ;;  %1939 = vmatprep.subr.mxu0 %v150_v49  ;;  %v208_v18 = vld [vmem:[#allocation2 + $0x270] sm:$0xff]  ;;  %v223_v20 = vld [vmem:[#allocation2 + $0x2e8] sm:$0xff]  ;;  %v222_v24 = vld [vmem:[#allocation2 + $0x2e0] sm:$0xff] }
  0x55   :  { %1974 = vmatprep.subr.mxu1 %v182_v50  ;;  %1940 = vmatpush3.msra.mxu0 %v134_v52  ;;  %v240_v19 = vld [vmem:[#allocation2 + $0x370] sm:$0xff]  ;;  %v255_v21 = vld [vmem:[#allocation2 + $0x3e8] sm:$0xff]  ;;  %v254_v25 = vld [vmem:[#allocation2 + $0x3e0] sm:$0xff] }
  0x56   :  { %1975 = vmatpush3.msra.mxu1 %v166_v53  ;;  %1941 = vmatprep.subr.mxu0 %v149_v55  ;;  %v207_v22 = vld [vmem:[#allocation2 + $0x268] sm:$0xff]  ;;  %v206_v26 = vld [vmem:[#allocation2 + $0x260] sm:$0xff]  ;;  %v221_v28 = vld [vmem:[#allocation2 + $0x2d8] sm:$0xff] }
  0x57   :  { %1976 = vmatprep.subr.mxu1 %v181_v56  ;;  %1942 = vmatpush3.msra.mxu0 %v133_v58  ;;  %v239_v23 = vld [vmem:[#allocation2 + $0x368] sm:$0xff]  ;;  %v238_v27 = vld [vmem:[#allocation2 + $0x360] sm:$0xff]  ;;  %v253_v29 = vld [vmem:[#allocation2 + $0x3d8] sm:$0xff] }
  0x58   :  { %1977 = vmatpush3.msra.mxu1 %v165_v59  ;;  %1943 = vmatprep.subr.mxu0 %v148_v60  ;;  %v205_v30 = vld [vmem:[#allocation2 + $0x258] sm:$0xff]  ;;  %v220_v33 = vld [vmem:[#allocation2 + $0x2d0] sm:$0xff]  ;;  %v219_v37 = vld [vmem:[#allocation2 + $0x2c8] sm:$0xff] }
  0x59   :  { %1978 = vmatprep.subr.mxu1 %v180_v61  ;;  %1944 = vmatpush3.msra.mxu0 %v132_v63  ;;  %v237_v31 = vld [vmem:[#allocation2 + $0x358] sm:$0xff]  ;;  %v252_v34 = vld [vmem:[#allocation2 + $0x3d0] sm:$0xff]  ;;  %v251_v38 = vld [vmem:[#allocation2 + $0x3c8] sm:$0xff] }
  0x5a   :  { %1979 = vmatpush3.msra.mxu1 %v164_v0  ;;  %1945 = vmatprep.subr.mxu0 %v147_v1  ;;  %v204_v35 = vld [vmem:[#allocation2 + $0x250] sm:$0xff]  ;;  %v203_v39 = vld [vmem:[#allocation2 + $0x248] sm:$0xff]  ;;  %v218_v41 = vld [vmem:[#allocation2 + $0x2c0] sm:$0xff] }
  0x5b   :  { %1980 = vmatprep.subr.mxu1 %v179_v2  ;;  %1946 = vmatpush3.msra.mxu0 %v131_v4  ;;  %v236_v36 = vld [vmem:[#allocation2 + $0x350] sm:$0xff]  ;;  %v235_v40 = vld [vmem:[#allocation2 + $0x348] sm:$0xff]  ;;  %v250_v42 = vld [vmem:[#allocation2 + $0x3c0] sm:$0xff] }
  0x5c   :  { %1981 = vmatpush3.msra.mxu1 %v163_v5  ;;  %1947 = vmatprep.subr.mxu0 %v146_v6  ;;  %v202_v43 = vld [vmem:[#allocation2 + $0x240] sm:$0xff]  ;;  %v217_v45 = vld [vmem:[#allocation2 + $0x2b8] sm:$0xff]  ;;  %v216_v49 = vld [vmem:[#allocation2 + $0x2b0] sm:$0xff] }
  0x5d   :  { %1982 = vmatprep.subr.mxu1 %v178_v7  ;;  %1948 = vmatpush3.msra.mxu0 %v130_v9  ;;  %v234_v44 = vld [vmem:[#allocation2 + $0x340] sm:$0xff]  ;;  %v249_v46 = vld [vmem:[#allocation2 + $0x3b8] sm:$0xff]  ;;  %v248_v50 = vld [vmem:[#allocation2 + $0x3b0] sm:$0xff] }
  0x5e   :  { %373 = vmatprep.mubr.f32.mxu0 %v282_v8  ;;  %1983 = vmatpush3.msra.mxu1 %v162_v10  ;;  %v201_v47 = vld [vmem:[#allocation2 + $0x238] sm:$0xff]  ;;  %v200_v52 = vld [vmem:[#allocation2 + $0x230] sm:$0xff]  ;;  %v215_v54 = vld [vmem:[#allocation2 + $0x2a8] sm:$0xff] }
  0x5f   :  { %374 = vmatmul.mubr.f32.vlgmr.msra.gmra.mxu0 %v274_v62  ;;  %443 = vmatprep.mubr.f32.mxu1 %v283_v11  ;;  %v233_v48 = vld [vmem:[#allocation2 + $0x338] sm:$0xff]  ;;  %v232_v53 = vld [vmem:[#allocation2 + $0x330] sm:$0xff]  ;;  %v247_v55 = vld [vmem:[#allocation2 + $0x3a8] sm:$0xff] }
  0x60   :  { %1987 = vmatprep.subr.mxu0 %v225_v12  ;;  %2022 = vmatprep.subr.mxu1 %v257_v13  ;;  %v129_v56 = vld [vmem:[%s3333_s2 + $0x8] sm:$0xff]  ;;  %v214_v59 = vld [vmem:[#allocation2 + $0x2a0] sm:$0xff]  ;;  %v213_v0 = vld [vmem:[#allocation2 + $0x298] sm:$0xff] }
  0x61   :  { %444 = vmatmul.mubr.f32.vlgmr.msra.gmra.mxu1 %v281_v3  ;;  %1988 = vmatpush3.msra.mxu0 %v209_v14  ;;  %v199_v57 = vld [vmem:[#allocation2 + $0x228] sm:$0xff]  ;;  %v246_v60 = vld [vmem:[#allocation2 + $0x3a0] sm:$0xff]  ;;  %v284_v63 = vcombine.high %v129_v56, %v129_v56  ;;  %v245_v1 = vld [vmem:[#allocation2 + $0x398] sm:$0xff]  ;;  %v291_v6 = vrot.slane %v129_v56, %v2784_v51 }
  0x62   :  { %2023 = vmatpush3.msra.mxu1 %v241_v15  ;;  %1989 = vmatprep.subr.mxu0 %v224_v16  ;;  %v231_v58 = vld [vmem:[#allocation2 + $0x328] sm:$0xff]  ;;  %v198_v61 = vld [vmem:[#allocation2 + $0x220] sm:$0xff]  ;;  %v197_v2 = vld [vmem:[#allocation2 + $0x218] sm:$0xff] }
  0x63   :  { %2024 = vmatprep.subr.mxu1 %v256_v17  ;;  %1990 = vmatpush3.msra.mxu0 %v208_v18  ;;  %v230_v62 = vld [vmem:[#allocation2 + $0x320] sm:$0xff]  ;;  %v229_v3 = vld [vmem:[#allocation2 + $0x318] sm:$0xff]  ;;  %v212_v4 = vld [vmem:[#allocation2 + $0x290] sm:$0xff]  ;;  %v298_v9 = vrot.slane %v284_v63, %v2784_v51  ;;  %v299_v16 = vcombine.high %v291_v6, %v291_v6 }
  0x64   :  { %2025 = vmatpush3.msra.mxu1 %v240_v19  ;;  %1991 = vmatprep.subr.mxu0 %v223_v20  ;;  %v244_v5 = vld [vmem:[#allocation2 + $0x390] sm:$0xff]  ;;  %v211_v10 = vld [vmem:[#allocation2 + $0x288] sm:$0xff]  ;;  %v210_v14 = vld [vmem:[#allocation2 + $0x280] sm:$0xff]  ;;  %v2627_v20 = vmov 0.0  }
  0x65   :  { %2026 = vmatprep.subr.mxu1 %v255_v21  ;;  %1992 = vmatpush3.msra.mxu0 %v207_v22  ;;  %v196_v7 = vld [vmem:[#allocation2 + $0x210] sm:$0xff]  ;;  %v243_v11 = vld [vmem:[#allocation2 + $0x388] sm:$0xff]  ;;  %v242_v15 = vld [vmem:[#allocation2 + $0x380] sm:$0xff]  ;;  %v300_v18 = vcombine.high %v298_v9, %v298_v9 }
  0x66   :  { %2027 = vmatpush3.msra.mxu1 %v239_v23  ;;  %1993 = vmatprep.subr.mxu0 %v222_v24  ;;  %v228_v8 = vld [vmem:[#allocation2 + $0x310] sm:$0xff]  ;;  %v195_v12 = vld [vmem:[#allocation2 + $0x208] sm:$0xff]  ;;  %v194_v17 = vld [vmem:[#allocation2 + $0x200] sm:$0xff] }
  0x67   :  { %2028 = vmatprep.subr.mxu1 %v254_v25  ;;  %1994 = vmatpush3.msra.mxu0 %v206_v26  ;;  %v227_v13 = vld [vmem:[#allocation2 + $0x308] sm:$0xff]  ;;  %v226_v51 = vld [vmem:[#allocation2 + $0x300] sm:$0xff]  ;;  %v606_v19 = vld [vmem:[%s3334_s8 + $0x78] sm:$0xff] }
  0x68   :  { %2029 = vmatpush3.msra.mxu1 %v238_v27  ;;  %1995 = vmatprep.subr.mxu0 %v221_v28  ;;  %v605_v21 = vld [vmem:[%s3334_s8 + $0x70] sm:$0xff]  ;;  %v604_v22 = vld [vmem:[%s3334_s8 + $0x68] sm:$0xff]  ;;  %v603_v23 = vld [vmem:[%s3334_s8 + $0x60] sm:$0xff] }
  0x69   :  { %2030 = vmatprep.subr.mxu1 %v253_v29  ;;  %1996 = vmatpush3.msra.mxu0 %v205_v30  ;;  %v602_v24 = vld [vmem:[%s3334_s8 + $0x58] sm:$0xff]  ;;  %v601_v25 = vld [vmem:[%s3334_s8 + $0x50] sm:$0xff]  ;;  %v600_v26 = vld [vmem:[%s3334_s8 + $0x48] sm:$0xff] }
  0x6a   :  { %2031 = vmatpush3.msra.mxu1 %v237_v31  ;;  %1997 = vmatprep.subr.mxu0 %v220_v33  ;;  %v599_v27 = vld [vmem:[%s3334_s8 + $0x40] sm:$0xff]  ;;  %v598_v28 = vld [vmem:[%s3334_s8 + $0x38] sm:$0xff]  ;;  %v597_v29 = vld [vmem:[%s3334_s8 + $0x30] sm:$0xff] }
  0x6b   :  { %2032 = vmatprep.subr.mxu1 %v252_v34  ;;  %1998 = vmatpush3.msra.mxu0 %v204_v35  ;;  %v596_v30 = vld [vmem:[%s3334_s8 + $0x28] sm:$0xff]  ;;  %v595_v31 = vld [vmem:[%s3334_s8 + $0x20] sm:$0xff]  ;;  %v594_v33 = vld [vmem:[%s3334_s8 + $0x18] sm:$0xff] }
  0x6c   :  { %2033 = vmatpush3.msra.mxu1 %v236_v36  ;;  %1999 = vmatprep.subr.mxu0 %v219_v37  ;;  %v593_v34 = vld [vmem:[%s3334_s8 + $0x10] sm:$0xff]  ;;  %v592_v35 = vld [vmem:[%s3334_s8 + $0x8] sm:$0xff]  ;;  %v591_v36 = vld [vmem:[%s3334_s8] sm:$0xff]  ;;  %s3337_s8 = sld [smem:[#allocation22_spill]] }
  0x6d   :  { %2034 = vmatprep.subr.mxu1 %v251_v38  ;;  %2000 = vmatpush3.msra.mxu0 %v203_v39  ;;  %v692_v37 = vld [vmem:[%s3335_s3 + $0x38] sm:$0xff]  ;;  %v691_v38 = vld [vmem:[%s3335_s3 + $0x30] sm:$0xff]  ;;  %v690_v39 = vld [vmem:[%s3335_s3 + $0x28] sm:$0xff] }
  0x6e   :  { %2035 = vmatpush3.msra.mxu1 %v235_v40  ;;  %2001 = vmatprep.subr.mxu0 %v218_v41  ;;  %v689_v40 = vld [vmem:[%s3335_s3 + $0x20] sm:$0xff]  ;;  %v688_v41 = vld [vmem:[%s3335_s3 + $0x18] sm:$0xff] }
  0x6f   :  { %2036 = vmatprep.subr.mxu1 %v250_v42  ;;  %2002 = vmatpush3.msra.mxu0 %v202_v43  ;;  %v685_v63 = vld [vmem:[%s3335_s3] sm:$0xff] }
  0x70   :  { %2037 = vmatpush3.msra.mxu1 %v234_v44  ;;  %2003 = vmatprep.subr.mxu0 %v217_v45 }
  0x71   :  { %2038 = vmatprep.subr.mxu1 %v249_v46  ;;  %2004 = vmatpush3.msra.mxu0 %v201_v47  ;;  %v1868_v46 = vld [vmem:[%s3336_s0] ss:$0 sm:$0xff]  ;;  %s3338_s0 = sld [smem:[#allocation19_spill]] }
  0x72   :  { %2039 = vmatpush3.msra.mxu1 %v233_v48  ;;  %2005 = vmatprep.subr.mxu0 %v216_v49 }
  0x73   :  { %2040 = vmatprep.subr.mxu1 %v248_v50  ;;  %2006 = vmatpush3.msra.mxu0 %v200_v52 }
  0x74   :  { %2041 = vmatpush3.msra.mxu1 %v232_v53  ;;  %2007 = vmatprep.subr.mxu0 %v215_v54 }
  0x75   :  { %2042 = vmatprep.subr.mxu1 %v247_v55  ;;  %2008 = vmatpush3.msra.mxu0 %v199_v57 }
  0x76   :  { %2043 = vmatpush3.msra.mxu1 %v231_v58  ;;  %2009 = vmatprep.subr.mxu0 %v214_v59 }
  0x77   :  { %2044 = vmatprep.subr.mxu1 %v246_v60  ;;  %2010 = vmatpush3.msra.mxu0 %v198_v61  ;;  %v687_v61 = vld [vmem:[%s3335_s3 + $0x10] sm:$0xff] }
  0x78   :  { %2045 = vmatpush3.msra.mxu1 %v230_v62  ;;  %2011 = vmatprep.subr.mxu0 %v213_v0  ;;  %v686_v62 = vld [vmem:[%s3335_s3 + $0x8] sm:$0xff]  ;;  %v782_v0 = vld [vmem:[%s3337_s8 + $0x38] sm:$0xff] }
  0x79   :  { %2046 = vmatprep.subr.mxu1 %v245_v1  ;;  %2012 = vmatpush3.msra.mxu0 %v197_v2  ;;  %v781_v1 = vld [vmem:[%s3337_s8 + $0x30] sm:$0xff]  ;;  %v780_v2 = vld [vmem:[%s3337_s8 + $0x28] sm:$0xff] }
  0x7a   :  { %2047 = vmatpush3.msra.mxu1 %v229_v3  ;;  %2013 = vmatprep.subr.mxu0 %v212_v4  ;;  %v779_v3 = vld [vmem:[%s3337_s8 + $0x20] sm:$0xff] }
  0x7b   :  { %2048 = vmatprep.subr.mxu1 %v244_v5  ;;  %2014 = vmatpush3.msra.mxu0 %v196_v7  ;;  %v1869_v4 = vld [vmem:[%s3338_s0] ss:$0 sm:$0xff]  ;;  %v778_v5 = vld [vmem:[%s3337_s8 + $0x18] sm:$0xff] }
  0x7c   :  { %2049 = vmatpush3.msra.mxu1 %v228_v8  ;;  %2015 = vmatprep.subr.mxu0 %v211_v10  ;;  %v777_v8 = vld [vmem:[%s3337_s8 + $0x10] sm:$0xff] }
  0x7d   :  { %2050 = vmatprep.subr.mxu1 %v243_v11  ;;  %2016 = vmatpush3.msra.mxu0 %v195_v12  ;;  %v790_v11 = vld [vmem:[%s3339_s25 + $0x38] sm:$0xff]  ;;  %v789_v12 = vld [vmem:[%s3339_s25 + $0x30] sm:$0xff] }
  0x7e   :  { %2051 = vmatpush3.msra.mxu1 %v227_v13  ;;  %2017 = vmatprep.subr.mxu0 %v210_v14  ;;  %v788_v13 = vld [vmem:[%s3339_s25 + $0x28] sm:$0xff]  ;;  %v787_v14 = vld [vmem:[%s3339_s25 + $0x20] sm:$0xff] }
  0x7f   :  { %2052 = vmatprep.subr.mxu1 %v242_v15  ;;  %2018 = vmatpush3.msra.mxu0 %v194_v17  ;;  %v786_v15 = vld [vmem:[%s3339_s25 + $0x18] sm:$0xff]  ;;  %v784_v17 = vld [vmem:[%s3339_s25 + $0x8] sm:$0xff] }
  0x80   :  { %513 = vmatprep.mubr.f32.mxu0 %v299_v16  ;;  %2053 = vmatpush3.msra.mxu1 %v226_v51  ;;  %v785_v16 = vld [vmem:[%s3339_s25 + $0x10] sm:$0xff]  ;;  %v776_v51 = vld [vmem:[%s3337_s8 + $0x8] sm:$0xff] }
  0x81   :  { %583 = vmatprep.mubr.f32.mxu1 %v300_v18  ;;  %514 = vmatmul.mubr.f32.vlgmr.msra.gmra.mxu0 %v291_v6  ;;  %v783_v18 = vld [vmem:[%s3339_s25] sm:$0xff] }
  0x82   :  { %584 = vmatmul.mubr.f32.vlgmr.msra.gmra.mxu1 %v298_v9  ;;  %2197 = vmatprep.subr.mxu0 %v2627_v20 }
  0x83   :  { %2232 = vmatprep.subr.mxu1 %v2627_v20  ;;  %2198 = vmatpush3.msra.mxu0 %v606_v19  ;;  %v775_v19 = vld [vmem:[%s3337_s8] sm:$0xff] }
  0x84   :  { %2199 = vmatprep.subr.mxu0 %v2627_v20  ;;  %2229 = vmatprep.mubr.msk.f32.mxu0 %vm2628_vm0, %v2627_v20 }
  0x85   :  { %2200 = vmatpush3.msra.mxu0 %v605_v21  ;;  %2248 = vmatprep.mubr.msk.f32.mxu1 %vm2628_vm0, %v2627_v20  ;;  %v955_v21 = vld [vmem:[#allocation5 + $0x38] sm:$0xff] }
  0x86   :  { %2201 = vmatprep.subr.mxu0 %v2627_v20  ;;  %2233 = vmatpush3.msra.mxu1 %v692_v37  ;;  %v1072_v37 = vld [vmem:[%s3305_s12 + $0x70] sm:$0xff] }
  0x87   :  { %2202 = vmatpush3.msra.mxu0 %v604_v22  ;;  %2234 = vmatprep.subr.mxu1 %v2627_v20 }
  0x88   :  { %2203 = vmatprep.subr.mxu0 %v2627_v20  ;;  %2235 = vmatpush3.msra.mxu1 %v691_v38  ;;  %v1071_v38 = vld [vmem:[%s3305_s12 + $0x68] sm:$0xff] }
  0x89   :  { %2204 = vmatpush3.msra.mxu0 %v603_v23  ;;  %2236 = vmatprep.subr.mxu1 %v2627_v20  ;;  %v954_v23 = vld [vmem:[#allocation5 + $0x30] sm:$0xff] }
  0x8a   :  { %2205 = vmatprep.subr.mxu0 %v2627_v20  ;;  %2237 = vmatpush3.msra.mxu1 %v690_v39  ;;  %v1070_v39 = vld [vmem:[%s3305_s12 + $0x60] sm:$0xff] }
  0x8b   :  { %2206 = vmatpush3.msra.mxu0 %v602_v24  ;;  %2238 = vmatprep.subr.mxu1 %v2627_v20  ;;  %v953_v24 = vld [vmem:[#allocation5 + $0x28] sm:$0xff] }
  0x8c   :  { %2207 = vmatprep.subr.mxu0 %v2627_v20  ;;  %2239 = vmatpush3.msra.mxu1 %v689_v40  ;;  %v1069_v40 = vld [vmem:[%s3305_s12 + $0x58] sm:$0xff] }
  0x8d   :  { %2208 = vmatpush3.msra.mxu0 %v601_v25  ;;  %2240 = vmatprep.subr.mxu1 %v2627_v20  ;;  %v952_v25 = vld [vmem:[#allocation5 + $0x20] sm:$0xff] }
  0x8e   :  { %2209 = vmatprep.subr.mxu0 %v2627_v20  ;;  %2241 = vmatpush3.msra.mxu1 %v688_v41  ;;  %v1068_v41 = vld [vmem:[%s3305_s12 + $0x50] sm:$0xff] }
  0x8f   :  { %2210 = vmatpush3.msra.mxu0 %v600_v26  ;;  %2242 = vmatprep.subr.mxu1 %v2627_v20  ;;  %v951_v26 = vld [vmem:[#allocation5 + $0x18] sm:$0xff] }
  0x90   :  { %2211 = vmatprep.subr.mxu0 %v2627_v20  ;;  %2243 = vmatpush3.msra.mxu1 %v687_v61  ;;  %v1160_v61 = vld [vmem:[%s3307_s14 + $0x48] sm:$0xff] }
  0x91   :  { %2212 = vmatpush3.msra.mxu0 %v599_v27  ;;  %2244 = vmatprep.subr.mxu1 %v2627_v20  ;;  %v950_v27 = vld [vmem:[#allocation5 + $0x10] sm:$0xff] }
  0x92   :  { %2213 = vmatprep.subr.mxu0 %v2627_v20  ;;  %2245 = vmatpush3.msra.mxu1 %v686_v62  ;;  %v1159_v62 = vld [vmem:[%s3307_s14 + $0x40] sm:$0xff] }
  0x93   :  { %2214 = vmatpush3.msra.mxu0 %v598_v28  ;;  %2246 = vmatprep.subr.mxu1 %v2627_v20  ;;  %v949_v28 = vld [vmem:[#allocation5 + $0x8] sm:$0xff] }
  0x94   :  { %2215 = vmatprep.subr.mxu0 %v2627_v20  ;;  %2247 = vmatpush3.msra.mxu1 %v685_v63  ;;  %v1158_v63 = vld [vmem:[%s3307_s14 + $0x38] sm:$0xff] }
  0x95   :  { %2216 = vmatpush3.msra.mxu0 %v597_v29  ;;  %2251 = vmatprep.subr.mxu1 %v2627_v20  ;;  %v948_v29 = vld [vmem:[#allocation5] sm:$0xff] }
  0x96   :  { %2217 = vmatprep.subr.mxu0 %v2627_v20 }
  0x97   :  { %2218 = vmatpush3.msra.mxu0 %v596_v30  ;;  %v1870_v30 = vld [vmem:[%s3340_s27] ss:$0 sm:$0xff] }
  0x98   :  { %2219 = vmatprep.subr.mxu0 %v2627_v20 }
  0x99   :  { %2220 = vmatpush3.msra.mxu0 %v595_v31 }
  0x9a   :  { %2221 = vmatprep.subr.mxu0 %v2627_v20 }
  0x9b   :  { %2222 = vmatpush3.msra.mxu0 %v594_v33 }
  0x9c   :  { %2223 = vmatprep.subr.mxu0 %v2627_v20 }
  0x9d   :  { %2224 = vmatpush3.msra.mxu0 %v593_v34 }
  0x9e   :  { %2225 = vmatprep.subr.mxu0 %v2627_v20 }
  0x9f   :  { %2226 = vmatpush3.msra.mxu0 %v592_v35 }
  0xa0   :  { %2227 = vmatprep.subr.mxu0 %v2627_v20 }
  0xa1   :  { %2228 = vmatpush3.msra.mxu0 %v591_v36  ;;  %v1073_v36 = vld [vmem:[%s3305_s12 + $0x78] sm:$0xff] }
  0xa2   :  { %2270 = vmatprep.subr.mxu0 %v2627_v20 }
 0x11f   :  { %v1949_v42 = vpop.f32.mrf.mxu0 }
 0x121   :  { %v1984_v43 = vpop.f32.mrf.mxu1  ;;  %v1950_v44 = vpop.f32.mrf.mxu0 }
 0x122   :  { %v1951_v45 = vadd.f32 %v1950_v44, %v1949_v42  ;;  %v1067_v42 = vld [vmem:[%s3305_s12 + $0x48] sm:$0xff]  ;;  %v1065_v44 = vld [vmem:[%s3305_s12 + $0x38] sm:$0xff] }
 0x123   :  { %v1985_v47 = vpop.f32.mrf.mxu1 }
 0x124   :  { %v376_v48 = vadd.f32 %v1951_v45, %v1868_v46  ;;  %v1986_v49 = vadd.f32 %v1985_v47, %v1984_v43  ;;  %v1066_v43 = vld [vmem:[%s3305_s12 + $0x40] sm:$0xff]  ;;  %v1064_v45 = vld [vmem:[%s3305_s12 + $0x30] sm:$0xff]  ;;  %v1063_v46 = vld [vmem:[%s3305_s12 + $0x28] sm:$0xff] }
 0x125   :  { %v1062_v47 = vld [vmem:[%s3305_s12 + $0x20] sm:$0xff] }
 0x126   :  { %v446_v55 = vadd.f32 %v1986_v49, %v376_v48  ;;  %v1061_v48 = vld [vmem:[%s3305_s12 + $0x18] sm:$0xff]  ;;  %v1060_v49 = vld [vmem:[%s3305_s12 + $0x10] sm:$0xff] }
 0x141   :  { %v2019_v50 = vpop.f32.mrf.mxu0 }
 0x142   :  { %v2054_v52 = vpop.f32.mrf.mxu1 }
 0x143   :  { %v2020_v53 = vpop.f32.mrf.mxu0 }
 0x144   :  { %v2055_v54 = vpop.f32.mrf.mxu1  ;;  %v2021_v56 = vadd.f32 %v2020_v53, %v2019_v50  ;;  %v1059_v50 = vld [vmem:[%s3305_s12 + $0x8] sm:$0xff]  ;;  %v1166_v53 = vld [vmem:[%s3307_s14 + $0x78] sm:$0xff] }
 0x145   :  { %v2056_v58 = vadd.f32 %v2055_v54, %v2054_v52  ;;  %v1058_v52 = vld [vmem:[%s3305_s12] sm:$0xff]  ;;  %v2630_v54 = vmov 93  }
 0x146   :  { %v516_v57 = vadd.f32 %v2021_v56, %v446_v55  ;;  %2483 = vset.pattern.permute.xlu1 %v2630_v54  ;;  %v2631_v55 = vmov 92   ;;  %v1165_v56 = vld [vmem:[%s3307_s14 + $0x70] sm:$0xff]  ;;  %v1440_v54 = vld [vmem:[#allocation7 + $0x8] sm:$0xff] }
 0x147   :  { %2482 = vset.pattern.permute.xlu0 %v2631_v55  ;;  %v1439_v55 = vld [vmem:[#allocation7] sm:$0xff] }
 0x148   :  { %v586_v59 = vadd.f32 %v2056_v58, %v516_v57  ;;  %v1164_v57 = vld [vmem:[%s3307_s14 + $0x68] sm:$0xff]  ;;  %v1163_v58 = vld [vmem:[%s3307_s14 + $0x60] sm:$0xff] }
 0x14a   :  { %v2889_v60 = vmax.f32 %v586_v59, 0.0  ;;  %v1162_v59 = vld [vmem:[%s3307_s14 + $0x58] sm:$0xff] }
 0x14c   :  { %590 = vst [vmem:[#allocation10] sm:$0x3] %v2889_v60  ;;  %2230 = vmatmul.mubr.f32.vlgmr.msra.gmra.mxu0 %v2889_v60 }
 0x14d   :  { %2286 = vmatprep.mubr.msk.f32.mxu0 %vm2628_vm0, %v2627_v20  ;;  %2271 = vmatpush3.msra.mxu0 %v782_v0  ;;  %v1157_v0 = vld [vmem:[%s3307_s14 + $0x30] sm:$0xff] }
 0x14e   :  { %2272 = vmatprep.subr.mxu0 %v2627_v20 }
 0x14f   :  { %2273 = vmatpush3.msra.mxu0 %v781_v1  ;;  %v1156_v1 = vld [vmem:[%s3307_s14 + $0x28] sm:$0xff] }
 0x150   :  { %2274 = vmatprep.subr.mxu0 %v2627_v20 }
 0x151   :  { %2275 = vmatpush3.msra.mxu0 %v780_v2  ;;  %v1155_v2 = vld [vmem:[%s3307_s14 + $0x20] sm:$0xff] }
 0x152   :  { %2276 = vmatprep.subr.mxu0 %v2627_v20 }
 0x153   :  { %2277 = vmatpush3.msra.mxu0 %v779_v3  ;;  %v1154_v3 = vld [vmem:[%s3307_s14 + $0x18] sm:$0xff] }
 0x154   :  { %2278 = vmatprep.subr.mxu0 %v2627_v20 }
 0x155   :  { %2279 = vmatpush3.msra.mxu0 %v778_v5  ;;  %v1152_v5 = vld [vmem:[%s3307_s14 + $0x8] sm:$0xff] }
 0x156   :  { %2280 = vmatprep.subr.mxu0 %v2627_v20 }
 0x157   :  { %2281 = vmatpush3.msra.mxu0 %v777_v8 }
 0x158   :  { %2282 = vmatprep.subr.mxu0 %v2627_v20 }
 0x159   :  { %2283 = vmatpush3.msra.mxu0 %v776_v51 }
 0x15a   :  { %2284 = vmatprep.subr.mxu0 %v2627_v20 }
 0x15b   :  { %2285 = vmatpush3.msra.mxu0 %v775_v19 }
 0x15c   :  { %2308 = vmatprep.subr.mxu0 %v2627_v20 }
 0x20c   :  { %v680_v6 = vpop.f32.mrf.mxu0 }
 0x20d   :  { %v681_v7 = vadd.f32 %v1869_v4, %v680_v6  ;;  %v1153_v4 = vld [vmem:[%s3307_s14 + $0x10] sm:$0xff]  ;;  %v1151_v6 = vld [vmem:[%s3307_s14] sm:$0xff] }
 0x20e   :  { %v2231_v9 = vpop.f32.mrf.mxu0 }
 0x20f   :  { %v684_v10 = vmax.f32 %v681_v7, 0.0 }
 0x211   :  { %791 = vrot.lane.b32.xlu0 %v684_v10, %s2629_s4  ;;  %2249 = vmatmul.mubr.msk.f32.vlgmr.msra.gmra.mxu1 %vm700_vm1, %v684_v10  ;;  %v1874_v10 = vld [vmem:[%s3302_s9] ss:$0 sm:$0xff] }
 0x212   :  { %2252 = vmatpush3.msra.mxu1 %v790_v11  ;;  %2267 = vmatprep.mubr.msk.f32.mxu1 %vm2628_vm0, %v2627_v20 }
 0x213   :  { %2253 = vmatprep.subr.mxu1 %v2627_v20 }
 0x214   :  { %2254 = vmatpush3.msra.mxu1 %v789_v12 }
 0x215   :  { %2255 = vmatprep.subr.mxu1 %v2627_v20 }
 0x216   :  { %2256 = vmatpush3.msra.mxu1 %v788_v13 }
 0x217   :  { %2257 = vmatprep.subr.mxu1 %v2627_v20 }
 0x218   :  { %2258 = vmatpush3.msra.mxu1 %v787_v14 }
 0x219   :  { %2259 = vmatprep.subr.mxu1 %v2627_v20 }
 0x21a   :  { %2260 = vmatpush3.msra.mxu1 %v786_v15 }
 0x21b   :  { %2261 = vmatprep.subr.mxu1 %v2627_v20 }
 0x21c   :  { %2262 = vmatpush3.msra.mxu1 %v785_v16  ;;  %v2632_v16 = vmov 91  }
 0x21d   :  { %2263 = vmatprep.subr.mxu1 %v2627_v20 }
 0x21e   :  { %2264 = vmatpush3.msra.mxu1 %v784_v17  ;;  %v1877_v17 = vld [vmem:[%s3306_s13] ss:$0 sm:$0xff] }
 0x21f   :  { %2265 = vmatprep.subr.mxu1 %v2627_v20 }
 0x220   :  { %2266 = vmatpush3.msra.mxu1 %v783_v18 }
 0x221   :  { %2289 = vmatprep.subr.mxu1 %v2627_v20 }
 0x283   :  { %v792_v22 = vpop.permute.xlu0 %791 }
 0x284   :  { %2268 = vmatmul.mubr.msk.f32.vlgmr.msra.gmra.mxu1 %vm700_vm1, %v792_v22  ;;  %v1245_v22 = vld [vmem:[%s3308_s15 + $0x40] sm:$0xff] }
 0x285   :  { %2290 = vmatpush3.msra.mxu1 %v955_v21  ;;  %2305 = vmatprep.mubr.msk.f32.mxu1 %vm2628_vm0, %v2627_v20  ;;  %v1237_v21 = vld [vmem:[%s3308_s15] sm:$0xff] }
 0x286   :  { %2291 = vmatprep.subr.mxu1 %v2627_v20 }
 0x287   :  { %2292 = vmatpush3.msra.mxu1 %v954_v23  ;;  %v1034_v23 = vand.u32 127, %v271_v32 }
 0x288   :  { %2293 = vmatprep.subr.mxu1 %v2627_v20 }
 0x289   :  { %2294 = vmatpush3.msra.mxu1 %v953_v24  ;;  %v1036_v24 = vand.u32 1, %v1034_v23  ;;  %vm1035_vm4 = vcmp.lt.s32.totalorder %v1034_v23, 42  ;;  %v1255_v23 = vld [vmem:[%s3309_s16 + $0x30] sm:$0xff] }
 0x28a   :  { %2295 = vmatprep.subr.mxu1 %v2627_v20 }
 0x28b   :  { %2296 = vmatpush3.msra.mxu1 %v952_v25  ;;  %vm1037_vm3 = vcmp.eq.s32.totalorder %v1036_v24, 0 }
 0x28c   :  { %2297 = vmatprep.subr.mxu1 %v2627_v20 }
 0x28d   :  { %2298 = vmatpush3.msra.mxu1 %v951_v26 }
 0x28e   :  { %2299 = vmatprep.subr.mxu1 %v2627_v20 }
 0x28f   :  { %2300 = vmatpush3.msra.mxu1 %v950_v27  ;;  %v1875_v27 = vld [vmem:[%s3304_s11] ss:$0 sm:$0xff] }
 0x290   :  { %2301 = vmatprep.subr.mxu1 %v2627_v20 }
 0x291   :  { %2302 = vmatpush3.msra.mxu1 %v949_v28 }
 0x292   :  { %2303 = vmatprep.subr.mxu1 %v2627_v20 }
 0x293   :  { %2304 = vmatpush3.msra.mxu1 %v948_v29 }
 0x294   :  { %2343 = vmatprep.subr.mxu1 %v2627_v20 }
 0x2d1   :  { %v770_v31 = vpop.f32.mrf.mxu1 }
 0x2d2   :  { %v771_v33 = vadd.f32 %v1870_v30, %v770_v31 }
 0x2d3   :  { %v2250_v34 = vpop.f32.mrf.mxu1 }
 0x2d4   :  { %v774_v35 = vmax.f32 %v771_v33, 0.0 }
 0x2d6   :  { %2287 = vmatmul.mubr.msk.f32.vlgmr.msra.gmra.mxu0 %vm700_vm1, %v774_v35  ;;  %2306 = vmatmul.mubr.msk.f32.vlgmr.msra.gmra.mxu1 %vm700_vm1, %v774_v35 }
 0x2d7   :  { %2309 = vmatpush3.msra.mxu0 %v1073_v36  ;;  %2340 = vmatprep.mubr.msk.f32.mxu0 %vm2628_vm0, %v2627_v20  ;;  %v1238_v36 = vld [vmem:[%s3308_s15 + $0x8] sm:$0xff] }
 0x2d8   :  { %2310 = vmatprep.subr.mxu0 %v2627_v20  ;;  %2375 = vmatprep.mubr.msk.f32.mxu1 %vm2628_vm0, %v2627_v20 }
 0x2d9   :  { %2311 = vmatpush3.msra.mxu0 %v1072_v37  ;;  %2344 = vmatpush3.msra.mxu1 %v1166_v53  ;;  %v1246_v37 = vld [vmem:[%s3308_s15 + $0x48] sm:$0xff]  ;;  %v1441_v53 = vld [vmem:[#allocation7 + $0x10] sm:$0xff] }
 0x2da   :  { %2312 = vmatprep.subr.mxu0 %v2627_v20  ;;  %2345 = vmatprep.subr.mxu1 %v2627_v20 }
 0x2db   :  { %2313 = vmatpush3.msra.mxu0 %v1071_v38  ;;  %2346 = vmatpush3.msra.mxu1 %v1165_v56  ;;  %v1239_v38 = vld [vmem:[%s3308_s15 + $0x10] sm:$0xff]  ;;  %v1634_v56 = vld [vmem:[#allocation8 + $0x38] sm:$0xff] }
 0x2dc   :  { %2314 = vmatprep.subr.mxu0 %v2627_v20  ;;  %2347 = vmatprep.subr.mxu1 %v2627_v20 }
 0x2dd   :  { %2315 = vmatpush3.msra.mxu0 %v1070_v39  ;;  %2348 = vmatpush3.msra.mxu1 %v1164_v57  ;;  %v1247_v39 = vld [vmem:[%s3308_s15 + $0x50] sm:$0xff] }
 0x2de   :  { %2316 = vmatprep.subr.mxu0 %v2627_v20  ;;  %2349 = vmatprep.subr.mxu1 %v2627_v20  ;;  %v1633_v57 = vld [vmem:[#allocation8 + $0x30] sm:$0xff] }
 0x2df   :  { %2317 = vmatpush3.msra.mxu0 %v1069_v40  ;;  %2350 = vmatpush3.msra.mxu1 %v1163_v58  ;;  %v1632_v58 = vld [vmem:[#allocation8 + $0x28] sm:$0xff] }
 0x2e0   :  { %2318 = vmatprep.subr.mxu0 %v2627_v20  ;;  %2351 = vmatprep.subr.mxu1 %v2627_v20 }
 0x2e1   :  { %2319 = vmatpush3.msra.mxu0 %v1068_v41  ;;  %2352 = vmatpush3.msra.mxu1 %v1162_v59  ;;  %v1446_v41 = vld [vmem:[#allocation7 + $0x38] sm:$0xff]  ;;  %v1631_v59 = vld [vmem:[#allocation8 + $0x20] sm:$0xff] }
 0x2e2   :  { %2320 = vmatprep.subr.mxu0 %v2627_v20  ;;  %2353 = vmatprep.subr.mxu1 %v2627_v20 }
 0x2e3   :  { %2321 = vmatpush3.msra.mxu0 %v1067_v42  ;;  %v1240_v42 = vld [vmem:[%s3308_s15 + $0x18] sm:$0xff] }
 0x2e4   :  { %2322 = vmatprep.subr.mxu0 %v2627_v20 }
 0x2e5   :  { %2323 = vmatpush3.msra.mxu0 %v1066_v43  ;;  %v1248_v43 = vld [vmem:[%s3308_s15 + $0x58] sm:$0xff] }
 0x2e6   :  { %2324 = vmatprep.subr.mxu0 %v2627_v20 }
 0x2e7   :  { %2325 = vmatpush3.msra.mxu0 %v1065_v44  ;;  %v1241_v44 = vld [vmem:[%s3308_s15 + $0x20] sm:$0xff] }
 0x2e8   :  { %2326 = vmatprep.subr.mxu0 %v2627_v20 }
 0x2e9   :  { %2327 = vmatpush3.msra.mxu0 %v1064_v45  ;;  %v1445_v45 = vld [vmem:[#allocation7 + $0x30] sm:$0xff] }
 0x2ea   :  { %2328 = vmatprep.subr.mxu0 %v2627_v20 }
 0x2eb   :  { %2329 = vmatpush3.msra.mxu0 %v1063_v46  ;;  %v1444_v46 = vld [vmem:[#allocation7 + $0x28] sm:$0xff] }
 0x2ec   :  { %2330 = vmatprep.subr.mxu0 %v2627_v20 }
 0x2ed   :  { %2331 = vmatpush3.msra.mxu0 %v1062_v47  ;;  %v1242_v47 = vld [vmem:[%s3308_s15 + $0x28] sm:$0xff] }
 0x2ee   :  { %2332 = vmatprep.subr.mxu0 %v2627_v20 }
 0x2ef   :  { %2333 = vmatpush3.msra.mxu0 %v1061_v48  ;;  %v1243_v48 = vld [vmem:[%s3308_s15 + $0x30] sm:$0xff] }
 0x2f0   :  { %2334 = vmatprep.subr.mxu0 %v2627_v20 }
 0x2f1   :  { %2335 = vmatpush3.msra.mxu0 %v1060_v49  ;;  %v1443_v49 = vld [vmem:[#allocation7 + $0x20] sm:$0xff] }
 0x2f2   :  { %2336 = vmatprep.subr.mxu0 %v2627_v20 }
 0x2f3   :  { %2337 = vmatpush3.msra.mxu0 %v1059_v50  ;;  %v1244_v50 = vld [vmem:[%s3308_s15 + $0x38] sm:$0xff] }
 0x2f4   :  { %2338 = vmatprep.subr.mxu0 %v2627_v20 }
 0x2f5   :  { %2339 = vmatpush3.msra.mxu0 %v1058_v52  ;;  %v1442_v52 = vld [vmem:[#allocation7 + $0x18] sm:$0xff] }
 0x2f6   :  { %2341 = vmatmul.mubr.f32.vlgmr.msra.gmra.mxu0 %v2889_v60  ;;  %v1161_v60 = vld [vmem:[%s3307_s14 + $0x50] sm:$0xff] }
 0x2f7   :  { %2354 = vmatpush3.msra.mxu1 %v1161_v60  ;;  %2380 = vmatprep.mubr.msk.f32.mxu0 %vm1261_vm2, %v1237_v21  ;;  %v1250_v60 = vld [vmem:[%s3309_s16 + $0x8] sm:$0xff]  ;;  %v1256_v21 = vld [vmem:[%s3309_s16 + $0x38] sm:$0xff] }
 0x2f8   :  { %2355 = vmatprep.subr.mxu1 %v2627_v20 }
 0x2f9   :  { %2356 = vmatpush3.msra.mxu1 %v1160_v61 }
 0x2fa   :  { %2357 = vmatprep.subr.mxu1 %v2627_v20 }
 0x2fb   :  { %2358 = vmatpush3.msra.mxu1 %v1159_v62  ;;  %v1249_v62 = vld [vmem:[%s3309_s16] sm:$0xff] }
 0x2fc   :  { %2359 = vmatprep.subr.mxu1 %v2627_v20 }
 0x2fd   :  { %2360 = vmatpush3.msra.mxu1 %v1158_v63 }
 0x2fe   :  { %2361 = vmatprep.subr.mxu1 %v2627_v20 }
 0x2ff   :  { %2362 = vmatpush3.msra.mxu1 %v1157_v0 }
 0x300   :  { %2363 = vmatprep.subr.mxu1 %v2627_v20 }
 0x301   :  { %2364 = vmatpush3.msra.mxu1 %v1156_v1 }
 0x302   :  { %2365 = vmatprep.subr.mxu1 %v2627_v20 }
 0x303   :  { %2366 = vmatpush3.msra.mxu1 %v1155_v2 }
 0x304   :  { %2367 = vmatprep.subr.mxu1 %v2627_v20 }
 0x305   :  { %2368 = vmatpush3.msra.mxu1 %v1154_v3  ;;  %v1252_v3 = vld [vmem:[%s3309_s16 + $0x18] sm:$0xff] }
 0x306   :  { %2369 = vmatprep.subr.mxu1 %v2627_v20 }
 0x307   :  { %2370 = vmatpush3.msra.mxu1 %v1153_v4 }
 0x308   :  { %2371 = vmatprep.subr.mxu1 %v2627_v20 }
 0x309   :  { %2372 = vmatpush3.msra.mxu1 %v1152_v5  ;;  %v1251_v5 = vld [vmem:[%s3309_s16 + $0x10] sm:$0xff] }
 0x30a   :  { %2373 = vmatprep.subr.mxu1 %v2627_v20 }
 0x30b   :  { %2374 = vmatpush3.msra.mxu1 %v1151_v6 }
 0x344   :  { %v861_v7 = vpop.f32.mrf.mxu1 }
 0x346   :  { %v2269_v8 = vpop.f32.mrf.mxu1 }
 0x396   :  { %v934_v9 = vpop.f32.mrf.mxu0  ;;  %v1029_v11 = vpop.f32.mrf.mxu1 }
 0x397   :  { %v935_v12 = vadd.f32 %v934_v9, %v861_v7  ;;  %v1030_v29 = vadd.f32 %v1875_v27, %v1029_v11 }
 0x398   :  { %v2288_v13 = vpop.f32.mrf.mxu0  ;;  %v2307_v14 = vpop.f32.mrf.mxu1 }
 0x399   :  { %v945_v15 = vadd.f32 %v1874_v10, %v935_v12  ;;  %v1254_v12 = vld [vmem:[%s3309_s16 + $0x28] sm:$0xff]  ;;  %v1253_v14 = vld [vmem:[%s3309_s16 + $0x20] sm:$0xff] }
 0x39b   :  { %946 = vst [vmem:[%s3315_s22] sm:$0x3] %v945_v15  ;;  %1044 = vperm.xlu1 %2483, %v945_v15   ;;  %1040 = vperm.xlu0 %2482, %v945_v15   ;;  %v947_v20 = vand.u32 2147483647, %v945_v15 }
 0x39f   :  { %2484 = vset.pattern.permute.xlu1 %v2632_v16  ;;  %2485 = vset.pattern.permute.xlu0 %v2632_v16 }
 0x3a0   :  { %1050 = vperm.xlu1 %2484, %v947_v20  }
 0x3b6   :  { %v1147_v18 = vpop.f32.mrf.mxu0 }
 0x3b7   :  { %v1148_v51 = vadd.f32 %v1877_v17, %v1147_v18  ;;  %v1257_v18 = vld [vmem:[%s3309_s16 + $0x40] sm:$0xff] }
 0x3b8   :  { %v2342_v19 = vpop.f32.mrf.mxu0 }
 0x3b9   :  { %2376 = vmatmul.mubr.f32.vlgmr.msra.gmra.mxu1 %v1148_v51 }
 0x3ba   :  { %2392 = vmatprep.mubr.msk.f32.mxu1 %vm1261_vm2, %v1245_v22 }
 0x416   :  { %v1045_v25 = vpop.permute.xlu1 %1044  ;;  %v1041_v26 = vpop.permute.xlu0 %1040 }
 0x417   :  { %v1047_v28 = vsel %vm1037_vm3, %v1041_v26, %v1045_v25 }
 0x418   :  { %v1054_v31 = vmul.f32 100.0, %v1047_v28 }
 0x41b   :  { %v1051_v30 = vpop.permute.xlu1 %1050 }
 0x41c   :  { %v1053_v33 = vmul.f32 %v1051_v30, %v1030_v29  ;;  %v1259_v30 = vld [vmem:[%s3309_s16 + $0x50] sm:$0xff] }
 0x41e   :  { %v1055_v34 = vadd.f32 %v1054_v31, %v1053_v33  ;;  %v1258_v33 = vld [vmem:[%s3309_s16 + $0x48] sm:$0xff] }
 0x420   :  { %v1056_v35 = vsel %vm1035_vm4, %v1055_v34, 0.0 }
 0x421   :  { %1057 = vst [vmem:[%s3316_s23] sm:$0x3] %v1056_v35 }
 0x479   :  { %v1233_v32 = vpop.f32.mrf.mxu1 }
 0x47a   :  { %2378 = vmatprep.subr.msk.mxu0 %vm1298_vm5, %v1233_v32  ;;  %2466 = vmatprep.subr.msk.mxu1 %vm1298_vm5, %v1233_v32 }
 0x47b   :  { %v2377_v40 = vpop.f32.mrf.mxu1  ;;  %2379 = vmatpush3.msk.msra.mxu0 %vm1298_vm5, %v1233_v32  ;;  %2467 = vmatpush3.msk.msra.mxu1 %vm1298_vm5, %v1233_v32 }
 0x47c   :  { %2381 = vmatmul.mubr.msk.f32.vlgmr.msra.gmra.mxu0 %vm1261_vm2, %v1238_v36  ;;  %2393 = vmatmul.mubr.msk.f32.vlgmr.msra.gmra.mxu1 %vm1261_vm2, %v1246_v37 }
 0x47d   :  { %2383 = vmatprep.mubr.msk.f32.mxu0 %vm1261_vm2, %v1239_v38  ;;  %2395 = vmatprep.mubr.msk.f32.mxu1 %vm1261_vm2, %v1247_v39  ;;  %v1260_v38 = vld [vmem:[%s3309_s16 + $0x58] sm:$0xff] }
 0x47e   :  { %2398 = vmatprep.subr.mxu1 %v1446_v41  ;;  %2432 = vmatprep.subr.mxu0 %v1634_v56 }
 0x47f   :  { %2399 = vmatpush3.msra.mxu1 %v1446_v41  ;;  %2433 = vmatpush3.msra.mxu0 %v1634_v56 }
 0x480   :  { %2384 = vmatmul.mubr.msk.f32.gmra.mxu0 %vm1261_vm2, %v1240_v42  ;;  %2396 = vmatmul.mubr.msk.f32.gmra.mxu1 %vm1261_vm2, %v1248_v43  ;;  %v1630_v43 = vld [vmem:[#allocation8 + $0x18] sm:$0xff] }
 0x481   :  { %2386 = vmatprep.mubr.msk.f32.mxu0 %vm1261_vm2, %v1241_v44  ;;  %2400 = vmatprep.subr.mxu1 %v1445_v45  ;;  %v1629_v44 = vld [vmem:[#allocation8 + $0x10] sm:$0xff] }
 0x482   :  { %2401 = vmatpush3.msra.mxu1 %v1445_v45  ;;  %2434 = vmatprep.subr.mxu0 %v1633_v57  ;;  %v1628_v45 = vld [vmem:[#allocation8 + $0x8] sm:$0xff] }
 0x483   :  { %2402 = vmatprep.subr.mxu1 %v1444_v46  ;;  %2435 = vmatpush3.msra.mxu0 %v1633_v57 }
 0x484   :  { %2387 = vmatmul.mubr.msk.f32.gmra.mxu0 %vm1261_vm2, %v1242_v47  ;;  %2403 = vmatpush3.msra.mxu1 %v1444_v46  ;;  %v1627_v46 = vld [vmem:[#allocation8] sm:$0xff] }
 0x485   :  { %2389 = vmatprep.mubr.msk.f32.mxu0 %vm1261_vm2, %v1243_v48  ;;  %2404 = vmatprep.subr.mxu1 %v1443_v49  ;;  %v1891_v47 = vld [vmem:[%s3311_s18] ss:$0 sm:$0xff]  ;;  %s2633_s18 = smov [#allocation10]  }
 0x486   :  { %2405 = vmatpush3.msra.mxu1 %v1443_v49  ;;  %2436 = vmatprep.subr.mxu0 %v1632_v58  ;;  %s1845_s22 = sshll.u32 %s2633_s18, 4  ;;  %s1846_s22 = int_to_ptr.vmem [resolvable:$true] %s1845_s22 }
 0x487   :  { %2406 = vmatprep.subr.mxu1 %v1442_v52  ;;  %2437 = vmatpush3.msra.mxu0 %v1632_v58  ;;  %s2592_s15 = scalar_lea.vmem %s1846_s22, 32  ;;  %p2597_p7 = scmp.lt.s32.totalorder %s1846_s22, %s1846_s22 }
 0x488   :  { %2390 = vmatmul.mubr.msk.f32.gmra.mxu0 %vm1261_vm2, %v1244_v50  ;;  %2407 = vmatpush3.msra.mxu1 %v1442_v52  ;;  %p2593_p6 = scmp.ne.s32.totalorder %s1846_s22, %s2592_s15  ;;  %p2598_p8 = scmp.lt.s32.totalorder %s2592_s15, %s2592_s15 }
 0x489   :  { %2408 = vmatprep.subr.mxu1 %v1441_v53  ;;  %2438 = vmatprep.subr.mxu0 %v1631_v59 }
 0x48a   :  { %2409 = vmatpush3.msra.mxu1 %v1441_v53  ;;  %2439 = vmatpush3.msra.mxu0 %v1631_v59  ;;  %p2599_p9 = por %p2598_p8, %p2597_p7 }
 0x48b   :  { %2410 = vmatprep.subr.mxu1 %v1440_v54  ;;  %2440 = vmatprep.subr.mxu0 %v1630_v43 }
 0x48c   :  { %2411 = vmatpush3.msra.mxu1 %v1440_v54  ;;  %2441 = vmatpush3.msra.mxu0 %v1630_v43  ;;  %p2600_p10 = pnand %p2599_p9, %p2593_p6 }
 0x48d   :  { %2412 = vmatprep.subr.mxu1 %v1439_v55  ;;  %2442 = vmatprep.subr.mxu0 %v1629_v44 }
 0x48e   :  { %2413 = vmatpush3.msra.mxu1 %v1439_v55  ;;  %2443 = vmatpush3.msra.mxu0 %v1629_v44 }
 0x48f   :  { %2444 = vmatprep.subr.mxu0 %v1628_v45 }
 0x490   :  { %2445 = vmatpush3.msra.mxu0 %v1628_v45 }
 0x491   :  { %2446 = vmatprep.subr.mxu0 %v1627_v46 }
 0x492   :  { %2447 = vmatpush3.msra.mxu0 %v1627_v46 }
 0x53c   :  { %v2382_v61 = vpop.f32.mrf.mxu0  ;;  %v2394_v1 = vpop.f32.mrf.mxu1 }
 0x53d   :  { %v1374_v63 = vadd.f32 %v2382_v61, %v1250_v60  ;;  %v1414_v37 = vadd.f32 %v2394_v1, %v1258_v33 }
 0x53e   :  { %v1368_v0 = vpop.f32.mrf.mxu0  ;;  %v1408_v10 = vpop.f32.mrf.mxu1 }
 0x53f   :  { %v1369_v2 = vadd.f32 %v1368_v0, %v1249_v62  ;;  %v1428_v7 = vmax.f32 %v1374_v63, 0.0  ;;  %v1409_v25 = vadd.f32 %v1408_v10, %v1257_v18  ;;  %v1436_v40 = vmax.f32 %v1414_v37, 0.0 }
 0x540   :  { %v2385_v4 = vpop.f32.mrf.mxu0  ;;  %v2397_v51 = vpop.f32.mrf.mxu1 }
 0x541   :  { %v1427_v6 = vmax.f32 %v1369_v2, 0.0  ;;  %v1384_v8 = vadd.f32 %v2385_v4, %v1252_v3  ;;  %v1435_v35 = vmax.f32 %v1409_v25, 0.0  ;;  %v1424_v41 = vadd.f32 %v2397_v51, %v1260_v38 }
 0x542   :  { %v1378_v9 = vpop.f32.mrf.mxu0  ;;  %v1418_v29 = vpop.f32.mrf.mxu1 }
 0x543   :  { %v1379_v11 = vadd.f32 %v1378_v9, %v1251_v5  ;;  %2414 = vmatprep.mubr.msk.f32.mxu1 %vm700_vm1, %v1427_v6  ;;  %v1430_v20 = vmax.f32 %v1384_v8, 0.0  ;;  %v1419_v32 = vadd.f32 %v1418_v29, %v1259_v30  ;;  %v1438_v42 = vmax.f32 %v1424_v41, 0.0 }
 0x544   :  { %v2388_v13 = vpop.f32.mrf.mxu0  ;;  %2415 = vmatmul.mubr.msk.f32.vlgmr.msra.gmra.mxu1 %vm700_vm1, %v1428_v7 }
 0x545   :  { %v1429_v15 = vmax.f32 %v1379_v11, 0.0  ;;  %v1394_v16 = vadd.f32 %v2388_v13, %v1254_v12  ;;  %v1437_v39 = vmax.f32 %v1419_v32, 0.0 }
 0x546   :  { %v1388_v17 = vpop.f32.mrf.mxu0 }
 0x547   :  { %v1389_v19 = vadd.f32 %v1388_v17, %v1253_v14  ;;  %2417 = vmatprep.mubr.msk.f32.mxu1 %vm700_vm1, %v1429_v15  ;;  %v1432_v26 = vmax.f32 %v1394_v16, 0.0 }
 0x548   :  { %v2391_v22 = vpop.f32.mrf.mxu0  ;;  %2418 = vmatmul.mubr.msk.f32.gmra.mxu1 %vm700_vm1, %v1430_v20 }
 0x549   :  { %v1431_v24 = vmax.f32 %v1389_v19, 0.0  ;;  %v1404_v27 = vadd.f32 %v2391_v22, %v1256_v21 }
 0x54a   :  { %v1398_v28 = vpop.f32.mrf.mxu0 }
 0x54b   :  { %v1399_v31 = vadd.f32 %v1398_v28, %v1255_v23  ;;  %2420 = vmatprep.mubr.msk.f32.mxu1 %vm700_vm1, %v1431_v24  ;;  %v1434_v36 = vmax.f32 %v1404_v27, 0.0 }
 0x54c   :  { %2421 = vmatmul.mubr.msk.f32.gmra.mxu1 %vm700_vm1, %v1432_v26 }
 0x54d   :  { %v1433_v34 = vmax.f32 %v1399_v31, 0.0 }
 0x54f   :  { %2423 = vmatprep.mubr.msk.f32.mxu1 %vm700_vm1, %v1433_v34 }
 0x550   :  { %2424 = vmatmul.mubr.msk.f32.gmra.mxu1 %vm700_vm1, %v1434_v36 }
 0x551   :  { %2426 = vmatprep.mubr.msk.f32.mxu1 %vm700_vm1, %v1435_v35 }
 0x554   :  { %2427 = vmatmul.mubr.msk.f32.gmra.mxu1 %vm700_vm1, %v1436_v40 }
 0x555   :  { %2429 = vmatprep.mubr.msk.f32.mxu1 %vm700_vm1, %v1437_v39 }
 0x558   :  { %2430 = vmatmul.mubr.msk.f32.gmra.mxu1 %vm700_vm1, %v1438_v42 }
 0x604   :  { %v2416_v48 = vpop.f32.mrf.mxu1 }
 0x605   :  { %v1562_v49 = vadd.f32 %v2416_v48, %v1891_v47 }
 0x606   :  { %v1556_v50 = vpop.f32.mrf.mxu1 }
 0x607   :  { %v1557_v52 = vadd.f32 %v1891_v47, %v1556_v50  ;;  %v1616_v55 = vmax.f32 %v1562_v49, 0.0 }
 0x608   :  { %v2419_v53 = vpop.f32.mrf.mxu1 }
 0x609   :  { %v1615_v54 = vmax.f32 %v1557_v52, 0.0  ;;  %v1572_v56 = vadd.f32 %v2419_v53, %v1891_v47 }
 0x60a   :  { %v1566_v57 = vpop.f32.mrf.mxu1 }
 0x60b   :  { %v1567_v58 = vadd.f32 %v1891_v47, %v1566_v57  ;;  %2448 = vmatprep.mubr.msk.f32.mxu0 %vm700_vm1, %v1615_v54  ;;  %v1618_v61 = vmax.f32 %v1572_v56, 0.0 }
 0x60c   :  { %v2422_v59 = vpop.f32.mrf.mxu1  ;;  %2449 = vmatmul.mubr.msk.f32.vlgmr.msra.gmra.mxu0 %vm700_vm1, %v1616_v55 }
 0x60d   :  { %v1617_v60 = vmax.f32 %v1567_v58, 0.0  ;;  %v1582_v62 = vadd.f32 %v2422_v59, %v1891_v47 }
 0x60e   :  { %v1576_v63 = vpop.f32.mrf.mxu1 }
 0x60f   :  { %v1577_v0 = vadd.f32 %v1891_v47, %v1576_v63  ;;  %2451 = vmatprep.mubr.msk.f32.mxu0 %vm700_vm1, %v1617_v60  ;;  %v1620_v3 = vmax.f32 %v1582_v62, 0.0 }
 0x610   :  { %v2425_v1 = vpop.f32.mrf.mxu1  ;;  %2452 = vmatmul.mubr.msk.f32.gmra.mxu0 %vm700_vm1, %v1618_v61 }
 0x611   :  { %v1619_v2 = vmax.f32 %v1577_v0, 0.0  ;;  %v1592_v4 = vadd.f32 %v2425_v1, %v1891_v47 }
 0x612   :  { %v1586_v5 = vpop.f32.mrf.mxu1 }
 0x613   :  { %v1587_v6 = vadd.f32 %v1891_v47, %v1586_v5  ;;  %2454 = vmatprep.mubr.msk.f32.mxu0 %vm700_vm1, %v1619_v2  ;;  %v1622_v9 = vmax.f32 %v1592_v4, 0.0 }
 0x614   :  { %v2428_v7 = vpop.f32.mrf.mxu1  ;;  %2455 = vmatmul.mubr.msk.f32.gmra.mxu0 %vm700_vm1, %v1620_v3 }
 0x615   :  { %v1621_v8 = vmax.f32 %v1587_v6, 0.0  ;;  %v1602_v10 = vadd.f32 %v2428_v7, %v1891_v47 }
 0x616   :  { %v1596_v11 = vpop.f32.mrf.mxu1 }
 0x617   :  { %v1597_v12 = vadd.f32 %v1891_v47, %v1596_v11  ;;  %2457 = vmatprep.mubr.msk.f32.mxu0 %vm700_vm1, %v1621_v8  ;;  %v1624_v15 = vmax.f32 %v1602_v10, 0.0 }
 0x618   :  { %v2431_v13 = vpop.f32.mrf.mxu1  ;;  %2458 = vmatmul.mubr.msk.f32.gmra.mxu0 %vm700_vm1, %v1622_v9 }
 0x619   :  { %v1623_v14 = vmax.f32 %v1597_v12, 0.0  ;;  %v1612_v20 = vadd.f32 %v2431_v13, %v1891_v47 }
 0x61a   :  { %v1606_v16 = vpop.f32.mrf.mxu1 }
 0x61b   :  { %v1607_v17 = vadd.f32 %v1891_v47, %v1606_v16  ;;  %2460 = vmatprep.mubr.msk.f32.mxu0 %vm700_vm1, %v1623_v14  ;;  %v1626_v51 = vmax.f32 %v1612_v20, 0.0 }
 0x61c   :  { %2461 = vmatmul.mubr.msk.f32.gmra.mxu0 %vm700_vm1, %v1624_v15 }
 0x61d   :  { %v1625_v18 = vmax.f32 %v1607_v17, 0.0 }
 0x61f   :  { %2463 = vmatprep.mubr.msk.f32.mxu0 %vm700_vm1, %v1625_v18 }
 0x620   :  { %2464 = vmatmul.mubr.msk.f32.gmra.mxu0 %vm700_vm1, %v1626_v51 }
 0x621   :  { %2603 = shalt.err (!%p2600_p10)
}
 0x622   :  { %1848 = dma.vmem_to_hbm [thread:$0]  %s1846_s22, 32, %s3314_s21, [#allocation4]   ;;  %v1904_v19 = vld [vmem:[%s3313_s20] ss:$0 sm:$0xff] }
 0x6cc   :  { %v2450_v21 = vpop.f32.mrf.mxu0 }
 0x6cd   :  { %v1750_v22 = vadd.f32 %v2450_v21, %v1904_v19 }
 0x6ce   :  { %v1744_v23 = vpop.f32.mrf.mxu0 }
 0x6cf   :  { %2488 = vtanh.f32 %v1750_v22  ;;  %v1745_v24 = vadd.f32 %v1904_v19, %v1744_v23 }
 0x6d0   :  { %v2453_v25 = vpop.f32.mrf.mxu0 }
 0x6d1   :  { %2490 = vtanh.f32 %v1745_v24  ;;  %v1760_v26 = vadd.f32 %v2453_v25, %v1904_v19 }
 0x6d2   :  { %v1754_v27 = vpop.f32.mrf.mxu0 }
 0x6d3   :  { %2492 = vtanh.f32 %v1760_v26  ;;  %v1755_v28 = vadd.f32 %v1904_v19, %v1754_v27 }
 0x6d4   :  { %v2456_v29 = vpop.f32.mrf.mxu0 }
 0x6d5   :  { %2494 = vtanh.f32 %v1755_v28  ;;  %v1770_v30 = vadd.f32 %v2456_v29, %v1904_v19 }
 0x6d6   :  { %v1764_v31 = vpop.f32.mrf.mxu0 }
 0x6d7   :  { %2496 = vtanh.f32 %v1770_v30  ;;  %v1765_v33 = vadd.f32 %v1904_v19, %v1764_v31 }
 0x6d8   :  { %v2459_v34 = vpop.f32.mrf.mxu0 }
 0x6d9   :  { %2498 = vtanh.f32 %v1765_v33  ;;  %v1780_v35 = vadd.f32 %v2459_v34, %v1904_v19 }
 0x6da   :  { %v1774_v32 = vpop.f32.mrf.mxu0 }
 0x6db   :  { %2500 = vtanh.f32 %v1780_v35  ;;  %v1775_v36 = vadd.f32 %v1904_v19, %v1774_v32 }
 0x6dc   :  { %v2489_v37 = vpop.eup %2488  ;;  %v2462_v38 = vpop.f32.mrf.mxu0 }
 0x6dd   :  { %v1816_v39 = vmul.f32 100.0, %v2489_v37  ;;  %2502 = vtanh.f32 %v1775_v36  ;;  %v1790_v40 = vadd.f32 %v2462_v38, %v1904_v19 }
 0x6de   :  { %v2491_v41 = vpop.eup %2490  ;;  %v1784_v42 = vpop.f32.mrf.mxu0 }
 0x6df   :  { %1828 = vst [vmem:[%s3317_s24 + $0x8] sm:$0xff] %v1816_v39  ;;  %v1815_v43 = vmul.f32 100.0, %v2491_v41  ;;  %2504 = vtanh.f32 %v1790_v40  ;;  %v1785_v44 = vadd.f32 %v1904_v19, %v1784_v42 }
 0x6e0   :  { %v2493_v45 = vpop.eup %2492  ;;  %v2465_v46 = vpop.f32.mrf.mxu0 }
 0x6e1   :  { %1827 = vst [vmem:[%s3317_s24] sm:$0xff] %v1815_v43  ;;  %v1818_v47 = vmul.f32 100.0, %v2493_v45  ;;  %2506 = vtanh.f32 %v1785_v44  ;;  %v1800_v48 = vadd.f32 %v2465_v46, %v1904_v19 }
 0x6e2   :  { %v2495_v49 = vpop.eup %2494  ;;  %v1794_v50 = vpop.f32.mrf.mxu0 }
 0x6e3   :  { %1830 = vst [vmem:[%s3317_s24 + $0x18] sm:$0xff] %v1818_v47  ;;  %v1817_v52 = vmul.f32 100.0, %v2495_v49  ;;  %2508 = vtanh.f32 %v1800_v48  ;;  %v1795_v53 = vadd.f32 %v1904_v19, %v1794_v50 }
 0x6e4   :  { %v2497_v54 = vpop.eup %2496 }
 0x6e5   :  { %1829 = vst [vmem:[%s3317_s24 + $0x10] sm:$0xff] %v1817_v52  ;;  %v1820_v55 = vmul.f32 100.0, %v2497_v54  ;;  %2510 = vtanh.f32 %v1795_v53 }
 0x6e6   :  { %v2499_v56 = vpop.eup %2498 }
 0x6e7   :  { %1832 = vst [vmem:[%s3317_s24 + $0x28] sm:$0xff] %v1820_v55  ;;  %v1819_v57 = vmul.f32 100.0, %v2499_v56 }
 0x6e8   :  { %v2501_v58 = vpop.eup %2500 }
 0x6e9   :  { %1831 = vst [vmem:[%s3317_s24 + $0x20] sm:$0xff] %v1819_v57  ;;  %v1822_v59 = vmul.f32 100.0, %v2501_v58 }
 0x6ea   :  { %v2503_v60 = vpop.eup %2502 }
 0x6eb   :  { %1834 = vst [vmem:[%s3317_s24 + $0x38] sm:$0xff] %v1822_v59  ;;  %v1821_v61 = vmul.f32 100.0, %v2503_v60 }
 0x6ec   :  { %v2505_v62 = vpop.eup %2504 }
 0x6ed   :  { %1833 = vst [vmem:[%s3317_s24 + $0x30] sm:$0xff] %v1821_v61  ;;  %v1824_v63 = vmul.f32 100.0, %v2505_v62 }
 0x6ee   :  { %v2507_v0 = vpop.eup %2506 }
 0x6ef   :  { %1836 = vst [vmem:[%s3317_s24 + $0x48] sm:$0xff] %v1824_v63  ;;  %v1823_v1 = vmul.f32 100.0, %v2507_v0 }
 0x6f0   :  { %v2509_v2 = vpop.eup %2508 }
 0x6f1   :  { %1835 = vst [vmem:[%s3317_s24 + $0x40] sm:$0xff] %v1823_v1  ;;  %v1826_v3 = vmul.f32 100.0, %v2509_v2 }
 0x6f2   :  { %v2511_v4 = vpop.eup %2510 }
 0x6f3   :  { %1838 = vst [vmem:[%s3317_s24 + $0x58] sm:$0xff] %v1826_v3  ;;  %v1825_v5 = vmul.f32 100.0, %v2511_v4 }
 0x6f5   :  { %1837 = vst [vmem:[%s3317_s24 + $0x50] sm:$0xff] %v1825_v5 }
 0x6f6   :  { %2618 = dma.done.wait [#allocation4], 32  }
 0x6f7   :  { %2619 = vsyncadd [#allocation4], 4294967264 }
 0x6f8   :  { %1864 = vsyncpa [#allocation3], 1 }
 0x6f9   :  { %1865 = vsyncpa [#allocation6], 1 }
 0x6fa   :  { %1866 = vsyncpa [#allocation9], 1 }
 0x6fb   :  { %1867 = vsyncpa [#allocation4], 1 }

</bundles_post_ra>
